<compile_context>
chip_gen: v5e
topology: v5e:2x2
jax: 0.10.0
libtpu: 0.0.40
codegen_flags: <defaults>
</compile_context>

<pallas_src>
import jax
import jax.numpy as jnp
import numpy as np
from jax import lax
from jax.experimental import pallas as pl
from jax.experimental.pallas import tpu as pltpu

HID = 512          # CONFIG['hid_dim']
IN_DIM = 768       # CLIP ViT-L/14 visual output dim
NUM_CLASSES = 2
DIMS = [IN_DIM, HID, HID // 2, HID // 4, NUM_CLASSES]   # 768->512->256->128->2


def _round_up(n, m):
    return (n + m - 1) // m * m


def cls_head_kernel(x_ref, w1_ref, w2_ref, w3_ref, w4t_ref, b_ref, b4_ref, o_ref):
    # Cast folded into the kernel (x tile arrives as f32 from HBM).
    x = x_ref[...].astype(jnp.bfloat16)
    # Layer 1: Linear(768 -> 512) + ReLU   (Dropout = identity at inference)
    h = jnp.dot(x, w1_ref[...], preferred_element_type=jnp.float32)
    h = jnp.maximum(h + b_ref[:, 0:512], 0.0).astype(jnp.bfloat16)
    # Layer 2: Linear(512 -> 256) + ReLU
    h = jnp.dot(h, w2_ref[...], preferred_element_type=jnp.float32)
    h = jnp.maximum(h + b_ref[:, 512:768], 0.0).astype(jnp.bfloat16)
    # Layer 3: Linear(256 -> 128) + ReLU
    h = jnp.dot(h, w3_ref[...], preferred_element_type=jnp.float32)
    h = jnp.maximum(h + b_ref[:, 768:896], 0.0).astype(jnp.bfloat16)
    # Layer 4 (transposed): (2,128) contracted with (TM,128) -> (2, TM).
    # Lane-dense store along the batch-tile axis; only 2 rows written.
    logits_t = lax.dot_general(
        w4t_ref[...], h,
        dimension_numbers=(((1,), (1,)), ((), ())),
        preferred_element_type=jnp.float32)
    o_ref[...] = logits_t + b4_ref[...]


def prepare_params(params):
    """One-time weight preprocessing (NOT on the per-call path)."""
    w1 = params[0][0].astype(jnp.bfloat16)                       # (768, 512)
    w2 = params[1][0].astype(jnp.bfloat16)                       # (512, 256)
    w3 = params[2][0].astype(jnp.bfloat16)                       # (256, 128)
    w4t = params[3][0].T.astype(jnp.bfloat16)                    # (2, 128)
    bias123 = jnp.concatenate(
        [params[i][1].astype(jnp.float32) for i in range(3)], axis=1)  # (1, 896)
    b4t = params[3][1].astype(jnp.float32).T                     # (2, 1)
    return (w1, w2, w3, w4t, bias123, b4t)


def _pick_tm(B):
    if B <= 128:
        # Single grid step: blocks equal the (padded) full array, any 8-multiple ok.
        return _round_up(max(B, 1), 8)
    # >=2 grid steps (v7x megacore), lane-dense 128-multiple tiles, capped at 512
    # to amortize the ~0.35 us per-step overhead without bloating VMEM.
    return min(512, _round_up((B + 1) // 2, 128))


def classifier_head(x, prepared):
    """x: [B, 768] CLIP features (f32). prepared: output of prepare_params()."""
    w1, w2, w3, w4t, bias123, b4t = prepared
    B = x.shape[0]
    TM = _pick_tm(B)
    B_pad = _round_up(B, TM)
    grid = (B_pad // TM,)

    x_p = x.astype(jnp.float32)
    if B_pad != B:
        x_p = jnp.pad(x_p, ((0, B_pad - B), (0, 0)))

    w_elems = sum(DIMS[i] * DIMS[i + 1] for i in range(4))
    flops = 2 * B_pad * w_elems
    bytes_accessed = (2 * w_elems + 4 * (bias123.size + b4t.size)
                      + 4 * B_pad * IN_DIM + 4 * B_pad * NUM_CLASSES)

    out_t = pl.pallas_call(
        cls_head_kernel,
        out_shape=jax.ShapeDtypeStruct((NUM_CLASSES, B_pad), jnp.float32),
        grid_spec=pltpu.PrefetchScalarGridSpec(
            num_scalar_prefetch=0,
            grid=grid,
            in_specs=[
                pl.BlockSpec((TM, IN_DIM), lambda i: (i, 0)),    # x tile (f32)
                pl.BlockSpec(w1.shape, lambda i: (0, 0)),        # resident weights
                pl.BlockSpec(w2.shape, lambda i: (0, 0)),
                pl.BlockSpec(w3.shape, lambda i: (0, 0)),
                pl.BlockSpec(w4t.shape, lambda i: (0, 0)),
                pl.BlockSpec(bias123.shape, lambda i: (0, 0)),
                pl.BlockSpec(b4t.shape, lambda i: (0, 0)),
            ],
            out_specs=pl.BlockSpec((NUM_CLASSES, TM), lambda i: (0, i)),
        ),
        compiler_params=pltpu.CompilerParams(
            dimension_semantics=("parallel",)),
        cost_estimate=pl.CostEstimate(
            flops=flops, transcendentals=0, bytes_accessed=bytes_accessed),
    )(x_p, w1, w2, w3, w4t, bias123, b4t)

    # Tiny (2, B_pad) slab -> (B, 2) logits.
    return out_t[:, :B].T


def init_params(key):
    params = []
    for i in range(len(DIMS) - 1):
        fan_in, fan_out = DIMS[i], DIMS[i + 1]
        key, kw, kb = jax.random.split(key, 3)
        bound = 1.0 / np.sqrt(fan_in)
        w = jax.random.uniform(kw, (fan_in, fan_out), jnp.float32, -bound, bound)
        b = jax.random.uniform(kb, (1, fan_out), jnp.float32, -bound, bound)
        params.append((w, b))
    return params


def reference_head(x, params):
    # Mirrors kernel numerics: bf16 matmul inputs, f32 accumulation + bias + ReLU.
    h = x.astype(jnp.bfloat16)
    for i, (w, b) in enumerate(params):
        h = jnp.dot(h, w.astype(jnp.bfloat16),
                    preferred_element_type=jnp.float32) + b.astype(jnp.float32)
        if i < len(params) - 1:
            h = jnp.maximum(h, 0.0).astype(jnp.bfloat16)
    return h


if __name__ == "__main__":
    key = jax.random.PRNGKey(0)
    key, kx = jax.random.split(key)

    batch = 2
    # x stands for the output of the (untranslated) CLIP visual backbone,
    # already flattened by `x.view(x.size(0), -1)` -> [B, 768].
    x = jax.random.normal(kx, (batch, IN_DIM), dtype=jnp.float32)

    params = init_params(key)
    prepared = prepare_params(params)          # one-time weight preprocessing

    out = classifier_head(x, prepared)
    out = jax.block_until_ready(out)

    ref = reference_head(x, params)
    assert out.shape == (batch, NUM_CLASSES)
    np.testing.assert_allclose(np.asarray(out), np.asarray(ref), rtol=1e-2, atol=1e-2)

    print("KERNEL_OK")
</pallas_src>

<mosaic_0001>
module attributes {stable_mosaic.version = 11 : i64} {
  func.func @cls_head_kernel(%arg0: i32, %arg1: memref<8x768xf32, #tpu.memory_space<vmem>>, %arg2: memref<768x512xbf16, #tpu.memory_space<vmem>>, %arg3: memref<512x256xbf16, #tpu.memory_space<vmem>>, %arg4: memref<256x128xbf16, #tpu.memory_space<vmem>>, %arg5: memref<2x128xbf16, #tpu.memory_space<vmem>>, %arg6: memref<1x896xf32, #tpu.memory_space<vmem>>, %arg7: memref<2x1xf32, #tpu.memory_space<vmem>>, %arg8: memref<2x8xf32, #tpu.memory_space<vmem>>) attributes {dimension_semantics = [#tpu.dimension_semantics<parallel>], iteration_bounds = array<i64: 1>, scalar_prefetch = 0 : i64, scratch_operands = 0 : i64, tpu.core_type = #tpu.core_type<tc>, window_params = [{transform_indices = @transform_0, window_bounds = array<i64: 8, 768>}, {pipeline_mode = #tpu.pipeline_mode<synchronous>, transform_indices = @transform_1, window_bounds = array<i64: 768, 512>}, {pipeline_mode = #tpu.pipeline_mode<synchronous>, transform_indices = @transform_2, window_bounds = array<i64: 512, 256>}, {pipeline_mode = #tpu.pipeline_mode<synchronous>, transform_indices = @transform_3, window_bounds = array<i64: 256, 128>}, {pipeline_mode = #tpu.pipeline_mode<synchronous>, transform_indices = @transform_4, window_bounds = array<i64: 2, 128>}, {pipeline_mode = #tpu.pipeline_mode<synchronous>, transform_indices = @transform_5, window_bounds = array<i64: 1, 896>}, {pipeline_mode = #tpu.pipeline_mode<synchronous>, transform_indices = @transform_6, window_bounds = array<i64: 2, 1>}, {transform_indices = @transform_7, window_bounds = array<i64: 2, 8>}]} {
    %c0 = arith.constant 0 : index
    %c0_0 = arith.constant 0 : index
    %0 = vector.load %arg1[%c0, %c0_0] : memref<8x768xf32, #tpu.memory_space<vmem>>, vector<8x768xf32>
    %1 = arith.truncf %0 : vector<8x768xf32> to vector<8x768xbf16>
    %c0_1 = arith.constant 0 : index
    %c0_2 = arith.constant 0 : index
    %2 = vector.load %arg2[%c0_1, %c0_2] : memref<768x512xbf16, #tpu.memory_space<vmem>>, vector<768x512xbf16>
    %cst = arith.constant dense<0.000000e+00> : vector<8x512xf32>
    %3 = tpu.matmul %1, %2, %cst {dimension_numbers = #tpu.dot_dimension_numbers<[1], [0], [0], [1], [0, 0, 1, 1], [], []>} : vector<8x768xbf16>, vector<768x512xbf16>, vector<8x512xf32> -> vector<8x512xf32>
    %c0_3 = arith.constant 0 : index
    %c0_4 = arith.constant 0 : index
    %4 = vector.load %arg6[%c0_3, %c0_4] : memref<1x896xf32, #tpu.memory_space<vmem>>, vector<1x512xf32>
    %5 = vector.broadcast %4 : vector<1x512xf32> to vector<8x512xf32>
    %6 = arith.addf %3, %5 : vector<8x512xf32>
    %cst_5 = arith.constant 0.000000e+00 : f32
    %7 = vector.broadcast %cst_5 : f32 to vector<8x512xf32>
    %8 = arith.maximumf %6, %7 : vector<8x512xf32>
    %9 = arith.truncf %8 : vector<8x512xf32> to vector<8x512xbf16>
    %c0_6 = arith.constant 0 : index
    %c0_7 = arith.constant 0 : index
    %10 = vector.load %arg3[%c0_6, %c0_7] : memref<512x256xbf16, #tpu.memory_space<vmem>>, vector<512x256xbf16>
    %cst_8 = arith.constant dense<0.000000e+00> : vector<8x256xf32>
    %11 = tpu.matmul %9, %10, %cst_8 {dimension_numbers = #tpu.dot_dimension_numbers<[1], [0], [0], [1], [0, 0, 1, 1], [], []>} : vector<8x512xbf16>, vector<512x256xbf16>, vector<8x256xf32> -> vector<8x256xf32>
    %c0_9 = arith.constant 0 : index
    %c512 = arith.constant 512 : index
    %12 = vector.load %arg6[%c0_9, %c512] : memref<1x896xf32, #tpu.memory_space<vmem>>, vector<1x256xf32>
    %13 = vector.broadcast %12 : vector<1x256xf32> to vector<8x256xf32>
    %14 = arith.addf %11, %13 : vector<8x256xf32>
    %cst_10 = arith.constant 0.000000e+00 : f32
    %15 = vector.broadcast %cst_10 : f32 to vector<8x256xf32>
    %16 = arith.maximumf %14, %15 : vector<8x256xf32>
    %17 = arith.truncf %16 : vector<8x256xf32> to vector<8x256xbf16>
    %c0_11 = arith.constant 0 : index
    %c0_12 = arith.constant 0 : index
    %18 = vector.load %arg4[%c0_11, %c0_12] : memref<256x128xbf16, #tpu.memory_space<vmem>>, vector<256x128xbf16>
    %cst_13 = arith.constant dense<0.000000e+00> : vector<8x128xf32>
    %19 = tpu.matmul %17, %18, %cst_13 {dimension_numbers = #tpu.dot_dimension_numbers<[1], [0], [0], [1], [0, 0, 1, 1], [], []>} : vector<8x256xbf16>, vector<256x128xbf16>, vector<8x128xf32> -> vector<8x128xf32>
    %c0_14 = arith.constant 0 : index
    %c768 = arith.constant 768 : index
    %20 = vector.load %arg6[%c0_14, %c768] : memref<1x896xf32, #tpu.memory_space<vmem>>, vector<1x128xf32>
    %21 = vector.broadcast %20 : vector<1x128xf32> to vector<8x128xf32>
    %22 = arith.addf %19, %21 : vector<8x128xf32>
    %cst_15 = arith.constant 0.000000e+00 : f32
    %23 = vector.broadcast %cst_15 : f32 to vector<8x128xf32>
    %24 = arith.maximumf %22, %23 : vector<8x128xf32>
    %25 = arith.truncf %24 : vector<8x128xf32> to vector<8x128xbf16>
    %c0_16 = arith.constant 0 : index
    %c0_17 = arith.constant 0 : index
    %26 = vector.load %arg5[%c0_16, %c0_17] : memref<2x128xbf16, #tpu.memory_space<vmem>>, vector<2x128xbf16>
    %cst_18 = arith.constant dense<0.000000e+00> : vector<2x8xf32>
    %27 = tpu.matmul %26, %25, %cst_18 {dimension_numbers = #tpu.dot_dimension_numbers<[1], [1], [0], [0], [0, 0, 1, 0], [], []>} : vector<2x128xbf16>, vector<8x128xbf16>, vector<2x8xf32> -> vector<2x8xf32>
    %c0_19 = arith.constant 0 : index
    %c0_20 = arith.constant 0 : index
    %28 = vector.load %arg7[%c0_19, %c0_20] : memref<2x1xf32, #tpu.memory_space<vmem>>, vector<2x1xf32>
    %29 = vector.broadcast %28 : vector<2x1xf32> to vector<2x8xf32>
    %30 = arith.addf %27, %29 : vector<2x8xf32>
    %c0_21 = arith.constant 0 : index
    %c0_22 = arith.constant 0 : index
    %31 = vector.load %arg8[%c0_21, %c0_22] : memref<2x8xf32, #tpu.memory_space<vmem>>, vector<2x8xf32>
    tpu.vector_store %arg8[%c0_21, %c0_22], %30 {strides = array<i32>} : memref<2x8xf32, #tpu.memory_space<vmem>>, vector<2x8xf32>,
    return
  }
  func.func @transform_0(%arg0: i32) -> (i32, i32) {
    %c0_i32 = arith.constant 0 : i32
    %c0_i32_0 = arith.constant 0 : i32
    return %arg0, %c0_i32 : i32, i32
  }
  func.func @transform_1(%arg0: i32) -> (i32, i32) {
    %c0_i32 = arith.constant 0 : i32
    %c0_i32_0 = arith.constant 0 : i32
    %c0_i32_1 = arith.constant 0 : i32
    return %c0_i32, %c0_i32_0 : i32, i32
  }
  func.func @transform_2(%arg0: i32) -> (i32, i32) {
    %c0_i32 = arith.constant 0 : i32
    %c0_i32_0 = arith.constant 0 : i32
    %c0_i32_1 = arith.constant 0 : i32
    return %c0_i32, %c0_i32_0 : i32, i32
  }
  func.func @transform_3(%arg0: i32) -> (i32, i32) {
    %c0_i32 = arith.constant 0 : i32
    %c0_i32_0 = arith.constant 0 : i32
    %c0_i32_1 = arith.constant 0 : i32
    return %c0_i32, %c0_i32_0 : i32, i32
  }
  func.func @transform_4(%arg0: i32) -> (i32, i32) {
    %c0_i32 = arith.constant 0 : i32
    %c0_i32_0 = arith.constant 0 : i32
    %c0_i32_1 = arith.constant 0 : i32
    return %c0_i32, %c0_i32_0 : i32, i32
  }
  func.func @transform_5(%arg0: i32) -> (i32, i32) {
    %c0_i32 = arith.constant 0 : i32
    %c0_i32_0 = arith.constant 0 : i32
    %c0_i32_1 = arith.constant 0 : i32
    return %c0_i32, %c0_i32_0 : i32, i32
  }
  func.func @transform_6(%arg0: i32) -> (i32, i32) {
    %c0_i32 = arith.constant 0 : i32
    %c0_i32_0 = arith.constant 0 : i32
    %c0_i32_1 = arith.constant 0 : i32
    return %c0_i32, %c0_i32_0 : i32, i32
  }
  func.func @transform_7(%arg0: i32) -> (i32, i32) {
    %c0_i32 = arith.constant 0 : i32
    %c0_i32_0 = arith.constant 0 : i32
    return %c0_i32, %arg0 : i32, i32
  }
}

</mosaic_0001>

<bundles_post_ra>
// kernel: tpu_custom_call.1
= control target key start
LH: loop header
LB: loop body
LE: loop exit
PB: predicated region body
PF: predicated region fallthrough
CT: control target
= control target key end

     0   :  { %12 = vsyncpa [#allocation3], 0  ;;  %s3966_s0 = inlined_call_operand.hbm [shape: f32[8,768], index: 0, kind: input, shape index: {}]   ;;  %s3967_s1 = inlined_call_operand.hbm [shape: bf16[768,512], index: 1, kind: input, shape index: {}]   ;;  %s3968_s2 = inlined_call_operand.hbm [shape: bf16[512,256], index: 2, kind: input, shape index: {}]   ;;  %s3969_s3 = inlined_call_operand.hbm [shape: bf16[256,128], index: 3, kind: input, shape index: {}]   ;;  %s3970_s4 = inlined_call_operand.hbm [shape: bf16[2,128], index: 4, kind: input, shape index: {}]   ;;  %s3971_s5 = inlined_call_operand.vmem [shape: f32[1,896], index: 5, kind: input, shape index: {}]   ;;  %s3972_s6 = inlined_call_operand.vmem [shape: f32[2,1], index: 6, kind: input, shape index: {}]   ;;  %s3973_s7 = inlined_call_operand.hbm [shape: f32[2,8], index: 7, kind: output, shape index: {}]  }
   0x1   :  { %13 = vsyncpa [#allocation6], 0 }
   0x2   :  { %14 = vsyncpa [#allocation9], 0  ;;  %s31_s26 = sshll.u32 %s3967_s1, 4  ;;  %s32_s26 = int_to_ptr.hbm [resolvable:$true] %s31_s26 }
   0x3   :  { %15 = vsyncpa [#allocation4], 0  ;;  %s3822_s27 = smov [#allocation5]   ;;  %s57_s8 = sshll.u32 %s3969_s3, 4  ;;  %s58_s8 = int_to_ptr.hbm [resolvable:$true] %s57_s8 }
   0x4   :  { %s33_s28 = sshll.u32 %s3822_s27, 4  ;;  %s3823_s9 = smov 256   ;;  %s34_s28 = int_to_ptr.vmem [resolvable:$true] %s33_s28 }
   0x5   :  { %s3824_s10 = smov 16   ;;  %s3825_s11 = smov [#allocation8]  }
   0x6   :  { %39 = dma.hbm_to_vmem [thread:$0]  %s32_s26, 24576, %s34_s28, [#allocation6], %s3823_s9, %s3823_s9, %s3824_s10  }
   0x7   :  { %s59_s12 = sshll.u32 %s3825_s11, 4  ;;  %s3826_s13 = smov 64   ;;  %s60_s12 = int_to_ptr.vmem [resolvable:$true] %s59_s12 }
   0x8   :  { %s3827_s14 = smov 4   ;;  %s21_s16 = sshll.u32 %s3966_s0, 4  ;;  %s22_s16 = int_to_ptr.hbm [resolvable:$true] %s21_s16 }
   0x9   :  { %65 = dma.hbm_to_vmem [thread:$0]  %s58_s8, 2048, %s60_s12, [#allocation9], %s3826_s13, %s3826_s13, %s3827_s14  }
   0xa   :  { %s3828_s17 = smov [#allocation2]   ;;  %s44_s20 = sshll.u32 %s3968_s2, 4  ;;  %s45_s20 = int_to_ptr.hbm [resolvable:$true] %s44_s20 }
   0xb   :  { %s23_s18 = sshll.u32 %s3828_s17, 4  ;;  %s3829_s21 = smov [#allocation7]   ;;  %s24_s18 = int_to_ptr.vmem [resolvable:$true] %s23_s18 }
   0xc   :  { %26 = dma.hbm_to_vmem [thread:$0]  %s22_s16, 768, %s24_s18, [#allocation3]  }
   0xd   :  { %s46_s22 = sshll.u32 %s3829_s21, 4  ;;  %s3830_s23 = smov 128   ;;  %s47_s22 = int_to_ptr.vmem [resolvable:$true] %s46_s22 }
   0xe   :  { %s3831_s24 = smov 8   ;;  %s71_s0 = sshll.u32 %s3970_s4, 4  ;;  %s72_s0 = int_to_ptr.hbm [resolvable:$true] %s71_s0 }
   0xf   :  { %52 = dma.hbm_to_vmem [thread:$0]  %s45_s20, 8192, %s47_s22, [#allocation6], %s3830_s23, %s3830_s23, %s3831_s24  }
  0x10   :  { %s3832_s27 = smov [#allocation10]  }
  0x11   :  { %s73_s28 = sshll.u32 %s3832_s27, 4  ;;  %s74_s28 = int_to_ptr.vmem [resolvable:$true] %s73_s28 }
  0x12   :  { %76 = dma.hbm_to_vmem [thread:$0]  %s72_s0, 16, %s74_s28, [#allocation9]  }
  0x13   :  { %3814 = dma.done.wait [#allocation3], 768  }
  0x14   :  { %3815 = vsyncadd [#allocation3], 4294966528 }
  0x15   :  { %3816 = dma.done.wait [#allocation6], 32768  }
  0x16   :  { %3817 = vsyncadd [#allocation6], 4294934528 }
  0x17   :  { %3818 = dma.done.wait [#allocation9], 2064  }
  0x18   :  { %3819 = vsyncadd [#allocation9], 4294965232  ;;  %v2409_v0 = vld [vmem:[#allocation5 + $0xe0] sm:$0xf]  ;;  %v3413_v1 = vld [vmem:[#allocation5 + $0xec] sm:$0xf0] }
  0x19   :  { %v2537_v2 = vld [vmem:[#allocation5 + $0x1e0] sm:$0xf]  ;;  %v2410_v3 = vor.u32 %v3413_v1, %v2409_v0  ;;  %v3445_v4 = vld [vmem:[#allocation5 + $0x1ec] sm:$0xf0]  ;;  %s2283_s1 = sshll.u32 %s3973_s7, 4  ;;  %vm2274_vm0 = vcmask 58368   ;;  %s2284_s1 = int_to_ptr.hbm [resolvable:$true] %s2283_s1 }
  0x1a   :  { %v2665_v5 = vld [vmem:[#allocation5 + $0x2e0] sm:$0xf]  ;;  %v3477_v6 = vld [vmem:[#allocation5 + $0x2ec] sm:$0xf0]  ;;  %v2538_v7 = vor.u32 %v3445_v4, %v2537_v2 }
  0x1b   :  { %v2666_v8 = vor.u32 %v3477_v6, %v2665_v5  ;;  %v2793_v9 = vld [vmem:[#allocation5 + $0x3e0] sm:$0xf]  ;;  %v3509_v10 = vld [vmem:[#allocation5 + $0x3ec] sm:$0xf0]  ;;  %1276 = vmatpush.bf16.msra.mxu0 %v2410_v3 }
  0x1c   :  { %v2393_v11 = vld [vmem:[#allocation5 + $0xc0] sm:$0xf]  ;;  %v2794_v12 = vor.u32 %v3509_v10, %v2793_v9  ;;  %v3409_v13 = vld [vmem:[#allocation5 + $0xcc] sm:$0xf0]  ;;  %1289 = vmatpush.bf16.msra.mxu1 %v2538_v7 }
  0x1d   :  { %v2521_v14 = vld [vmem:[#allocation5 + $0x1c0] sm:$0xf]  ;;  %v3441_v15 = vld [vmem:[#allocation5 + $0x1cc] sm:$0xf0]  ;;  %1302 = vmatpush.bf16.msra.mxu2 %v2666_v8  ;;  %v2394_v16 = vor.u32 %v3409_v13, %v2393_v11 }
  0x1e   :  { %v2522_v17 = vor.u32 %v3441_v15, %v2521_v14  ;;  %v2649_v18 = vld [vmem:[#allocation5 + $0x2c0] sm:$0xf]  ;;  %v3473_v19 = vld [vmem:[#allocation5 + $0x2cc] sm:$0xf0]  ;;  %1315 = vmatpush.bf16.msra.mxu3 %v2794_v12 }
  0x1f   :  { %v2777_v20 = vld [vmem:[#allocation5 + $0x3c0] sm:$0xf]  ;;  %v2650_v21 = vor.u32 %v3473_v19, %v2649_v18  ;;  %v3505_v22 = vld [vmem:[#allocation5 + $0x3cc] sm:$0xf0]  ;;  %1277 = vmatpush.bf16.msra.mxu0 %v2394_v16 }
  0x20   :  { %v2377_v23 = vld [vmem:[#allocation5 + $0xa0] sm:$0xf]  ;;  %v3405_v24 = vld [vmem:[#allocation5 + $0xac] sm:$0xf0]  ;;  %v2778_v25 = vor.u32 %v3505_v22, %v2777_v20  ;;  %1290 = vmatpush.bf16.msra.mxu1 %v2522_v17 }
  0x21   :  { %v2505_v26 = vld [vmem:[#allocation5 + $0x1a0] sm:$0xf]  ;;  %v3437_v27 = vld [vmem:[#allocation5 + $0x1ac] sm:$0xf0]  ;;  %v2378_v29 = vor.u32 %v3405_v24, %v2377_v23  ;;  %1303 = vmatpush.bf16.msra.mxu2 %v2650_v21 }
  0x22   :  { %v2633_v28 = vld [vmem:[#allocation5 + $0x2a0] sm:$0xf]  ;;  %v3469_v30 = vld [vmem:[#allocation5 + $0x2ac] sm:$0xf0]  ;;  %v2506_v33 = vor.u32 %v3437_v27, %v2505_v26  ;;  %1316 = vmatpush.bf16.msra.mxu3 %v2778_v25 }
  0x23   :  { %v2761_v31 = vld [vmem:[#allocation5 + $0x3a0] sm:$0xf]  ;;  %v3501_v32 = vld [vmem:[#allocation5 + $0x3ac] sm:$0xf0]  ;;  %v2634_v34 = vor.u32 %v3469_v30, %v2633_v28  ;;  %1278 = vmatpush.bf16.msra.mxu0 %v2378_v29 }
  0x24   :  { %v2361_v35 = vld [vmem:[#allocation5 + $0x80] sm:$0xf]  ;;  %v3401_v36 = vld [vmem:[#allocation5 + $0x8c] sm:$0xf0]  ;;  %v2762_v38 = vor.u32 %v3501_v32, %v2761_v31  ;;  %1291 = vmatpush.bf16.msra.mxu1 %v2506_v33  ;;  %v3411_v33 = vld [vmem:[#allocation5 + $0xe4] sm:$0xf] }
  0x25   :  { %v2489_v37 = vld [vmem:[#allocation5 + $0x180] sm:$0xf]  ;;  %v3433_v39 = vld [vmem:[#allocation5 + $0x18c] sm:$0xf0]  ;;  %v2362_v44 = vor.u32 %v3401_v36, %v2361_v35  ;;  %1304 = vmatpush.bf16.msra.mxu2 %v2634_v34  ;;  %v2411_v34 = vld [vmem:[#allocation5 + $0xf0] sm:$0xf0] }
  0x26   :  { %v2617_v40 = vld [vmem:[#allocation5 + $0x280] sm:$0xf]  ;;  %v3465_v41 = vld [vmem:[#allocation5 + $0x28c] sm:$0xf0]  ;;  %v2490_v45 = vor.u32 %v3433_v39, %v2489_v37  ;;  %1317 = vmatpush.bf16.msra.mxu3 %v2762_v38  ;;  %v3443_v37 = vld [vmem:[#allocation5 + $0x1e4] sm:$0xf] }
  0x27   :  { %v2745_v42 = vld [vmem:[#allocation5 + $0x380] sm:$0xf]  ;;  %v3497_v43 = vld [vmem:[#allocation5 + $0x38c] sm:$0xf0]  ;;  %v2618_v46 = vor.u32 %v3465_v41, %v2617_v40  ;;  %1279 = vmatpush.bf16.msra.mxu0 %v2362_v44  ;;  %v2539_v38 = vld [vmem:[#allocation5 + $0x1f0] sm:$0xf0] }
  0x28   :  { %v2345_v47 = vld [vmem:[#allocation5 + $0x60] sm:$0xf]  ;;  %v3397_v48 = vld [vmem:[#allocation5 + $0x6c] sm:$0xf0]  ;;  %v2746_v50 = vor.u32 %v3497_v43, %v2745_v42  ;;  %1292 = vmatpush.bf16.msra.mxu1 %v2490_v45  ;;  %v2414_v42 = vor.u32 %v3411_v33, %v2411_v34 }
  0x29   :  { %v2473_v49 = vld [vmem:[#allocation5 + $0x160] sm:$0xf]  ;;  %v3429_v51 = vld [vmem:[#allocation5 + $0x16c] sm:$0xf0]  ;;  %v2346_v56 = vor.u32 %v3397_v48, %v2345_v47  ;;  %1305 = vmatpush.bf16.msra.mxu2 %v2618_v46  ;;  %v2542_v46 = vor.u32 %v3443_v37, %v2539_v38  ;;  %v3407_v48 = vld [vmem:[#allocation5 + $0xc4] sm:$0xf] }
  0x2a   :  { %v2601_v52 = vld [vmem:[#allocation5 + $0x260] sm:$0xf]  ;;  %v3461_v53 = vld [vmem:[#allocation5 + $0x26c] sm:$0xf0]  ;;  %v2474_v57 = vor.u32 %v3429_v51, %v2473_v49  ;;  %1318 = vmatpush.bf16.msra.mxu3 %v2746_v50  ;;  %v2395_v49 = vld [vmem:[#allocation5 + $0xd0] sm:$0xf0] }
  0x2b   :  { %v2729_v54 = vld [vmem:[#allocation5 + $0x360] sm:$0xf]  ;;  %v3493_v55 = vld [vmem:[#allocation5 + $0x36c] sm:$0xf0]  ;;  %v2602_v58 = vor.u32 %v3461_v53, %v2601_v52  ;;  %1280 = vmatpush.bf16.msra.mxu0 %v2346_v56  ;;  %v3439_v50 = vld [vmem:[#allocation5 + $0x1c4] sm:$0xf] }
  0x2c   :  { %v2329_v59 = vld [vmem:[#allocation5 + $0x40] sm:$0xf]  ;;  %v3393_v60 = vld [vmem:[#allocation5 + $0x4c] sm:$0xf0]  ;;  %v2730_v62 = vor.u32 %v3493_v55, %v2729_v54  ;;  %1293 = vmatpush.bf16.msra.mxu1 %v2474_v57  ;;  %v2523_v51 = vld [vmem:[#allocation5 + $0x1d0] sm:$0xf0]  ;;  %v2398_v55 = vor.u32 %v3407_v48, %v2395_v49 }
  0x2d   :  { %v2457_v61 = vld [vmem:[#allocation5 + $0x140] sm:$0xf]  ;;  %v3425_v63 = vld [vmem:[#allocation5 + $0x14c] sm:$0xf0]  ;;  %v2330_v4 = vor.u32 %v3393_v60, %v2329_v59  ;;  %1306 = vmatpush.bf16.msra.mxu2 %v2602_v58  ;;  %v2526_v59 = vor.u32 %v3439_v50, %v2523_v51  ;;  %v3403_v60 = vld [vmem:[#allocation5 + $0xa4] sm:$0xf] }
  0x2e   :  { %v2585_v0 = vld [vmem:[#allocation5 + $0x240] sm:$0xf]  ;;  %v3457_v1 = vld [vmem:[#allocation5 + $0x24c] sm:$0xf0]  ;;  %v2458_v5 = vor.u32 %v3425_v63, %v2457_v61  ;;  %1319 = vmatpush.bf16.msra.mxu3 %v2730_v62  ;;  %v2379_v61 = vld [vmem:[#allocation5 + $0xb0] sm:$0xf0] }
  0x2f   :  { %v2713_v2 = vld [vmem:[#allocation5 + $0x340] sm:$0xf]  ;;  %v3489_v3 = vld [vmem:[#allocation5 + $0x34c] sm:$0xf0]  ;;  %v2586_v6 = vor.u32 %v3457_v1, %v2585_v0  ;;  %1281 = vmatpush.bf16.msra.mxu0 %v2330_v4  ;;  %v3435_v62 = vld [vmem:[#allocation5 + $0x1a4] sm:$0xf] }
  0x30   :  { %v2313_v7 = vld [vmem:[#allocation5 + $0x20] sm:$0xf]  ;;  %v3389_v8 = vld [vmem:[#allocation5 + $0x2c] sm:$0xf0]  ;;  %v2714_v10 = vor.u32 %v3489_v3, %v2713_v2  ;;  %1294 = vmatpush.bf16.msra.mxu1 %v2458_v5  ;;  %v2507_v63 = vld [vmem:[#allocation5 + $0x1b0] sm:$0xf0]  ;;  %v2382_v5 = vor.u32 %v3403_v60, %v2379_v61 }
  0x31   :  { %v2441_v9 = vld [vmem:[#allocation5 + $0x120] sm:$0xf]  ;;  %v3421_v11 = vld [vmem:[#allocation5 + $0x12c] sm:$0xf0]  ;;  %v2314_v16 = vor.u32 %v3389_v8, %v2313_v7  ;;  %1307 = vmatpush.bf16.msra.mxu2 %v2586_v6 }
  0x32   :  { %v2569_v12 = vld [vmem:[#allocation5 + $0x220] sm:$0xf]  ;;  %v3453_v13 = vld [vmem:[#allocation5 + $0x22c] sm:$0xf0]  ;;  %v2442_v19 = vor.u32 %v3421_v11, %v2441_v9  ;;  %1320 = vmatpush.bf16.msra.mxu3 %v2714_v10  ;;  %v105_v10 = vld [vmem:[#allocation2 + $0x18] sm:$0xff]  ;;  %v2510_v11 = vor.u32 %v3435_v62, %v2507_v63 }
  0x33   :  { %v2697_v14 = vld [vmem:[#allocation5 + $0x320] sm:$0xf]  ;;  %v3485_v15 = vld [vmem:[#allocation5 + $0x32c] sm:$0xf0]  ;;  %v2570_v20 = vor.u32 %v3453_v13, %v2569_v12  ;;  %1282 = vmatpush.bf16.msra.mxu0 %v2314_v16  ;;  %v3399_v13 = vld [vmem:[#allocation5 + $0x84] sm:$0xf] }
  0x34   :  { %v2297_v17 = vld [vmem:[#allocation5] sm:$0xf]  ;;  %v3385_v18 = vld [vmem:[#allocation5 + $0xc] sm:$0xf0]  ;;  %v2698_v24 = vor.u32 %v3485_v15, %v2697_v14  ;;  %1295 = vmatpush.bf16.msra.mxu1 %v2442_v19  ;;  %v2363_v14 = vld [vmem:[#allocation5 + $0x90] sm:$0xf0]  ;;  %v3894_v15 = vpack.c.bf16 %v105_v10, %v105_v10 }
  0x35   :  { %v2425_v21 = vld [vmem:[#allocation5 + $0x100] sm:$0xf]  ;;  %v3417_v22 = vld [vmem:[#allocation5 + $0x10c] sm:$0xf0]  ;;  %v2298_v31 = vor.u32 %v3385_v18, %v2297_v17  ;;  %1308 = vmatpush.bf16.msra.mxu2 %v2570_v20  ;;  %v3431_v16 = vld [vmem:[#allocation5 + $0x184] sm:$0xf] }
  0x36   :  { %v2553_v23 = vld [vmem:[#allocation5 + $0x200] sm:$0xf]  ;;  %v3449_v25 = vld [vmem:[#allocation5 + $0x20c] sm:$0xf0]  ;;  %v2426_v35 = vor.u32 %v3417_v22, %v2425_v21  ;;  %1321 = vmatpush.bf16.msra.mxu3 %v2698_v24  ;;  %v2491_v17 = vld [vmem:[#allocation5 + $0x190] sm:$0xf0]  ;;  %v2366_v21 = vor.u32 %v3399_v13, %v2363_v14 }
  0x37   :  { %v2681_v26 = vld [vmem:[#allocation5 + $0x300] sm:$0xf]  ;;  %v3481_v27 = vld [vmem:[#allocation5 + $0x30c] sm:$0xf0]  ;;  %v2554_v36 = vor.u32 %v3449_v25, %v2553_v23  ;;  %1283 = vmatpush.bf16.msra.mxu0 %v2298_v31  ;;  %v103_v19 = vld [vmem:[#allocation2 + $0x8] sm:$0xff] }
  0x38   :  { %v2921_v28 = vld [vmem:[#allocation5 + $0x4e0] sm:$0xf]  ;;  %v3541_v29 = vld [vmem:[#allocation5 + $0x4ec] sm:$0xf0]  ;;  %v2682_v39 = vor.u32 %v3481_v27, %v2681_v26  ;;  %1296 = vmatpush.bf16.msra.mxu1 %v2426_v35  ;;  %v3899_v25 = vpack.c.bf16 %v103_v19, %v103_v19  ;;  %v2494_v26 = vor.u32 %v3431_v16, %v2491_v17  ;;  %v2475_v31 = vld [vmem:[#allocation5 + $0x170] sm:$0xf0] }
  0x39   :  { %v3049_v30 = vld [vmem:[#allocation5 + $0x5e0] sm:$0xf]  ;;  %v3573_v32 = vld [vmem:[#allocation5 + $0x5ec] sm:$0xf0]  ;;  %v2922_v40 = vor.u32 %v3541_v29, %v2921_v28  ;;  %1309 = vmatpush.bf16.msra.mxu2 %v2554_v36  ;;  %v3395_v28 = vld [vmem:[#allocation5 + $0x64] sm:$0xf] }
  0x3a   :  { %v3050_v41 = vor.u32 %v3573_v32, %v3049_v30  ;;  %v2905_v43 = vld [vmem:[#allocation5 + $0x4c0] sm:$0xf]  ;;  %v3537_v44 = vld [vmem:[#allocation5 + $0x4cc] sm:$0xf0]  ;;  %1322 = vmatpush.bf16.msra.mxu3 %v2682_v39  ;;  %v2347_v29 = vld [vmem:[#allocation5 + $0x70] sm:$0xf0] }
  0x3b   :  { %v3033_v45 = vld [vmem:[#allocation5 + $0x5c0] sm:$0xf]  ;;  %v3569_v47 = vld [vmem:[#allocation5 + $0x5cc] sm:$0xf0]  ;;  %1328 = vmatpush.bf16.msrb.mxu0 %v2922_v40  ;;  %v2906_v52 = vor.u32 %v3537_v44, %v2905_v43  ;;  %v3427_v30 = vld [vmem:[#allocation5 + $0x164] sm:$0xf]  ;;  %1297 = vmatmul.bf16.vlgmr.msra.gmra.mxu1 %v3899_v25  ;;  %v2350_v34 = vor.u32 %v3395_v28, %v2347_v29 }
  0x3c   :  { %v2889_v53 = vld [vmem:[#allocation5 + $0x4a0] sm:$0xf]  ;;  %1341 = vmatpush.bf16.msrb.mxu1 %v3050_v41  ;;  %v3034_v54 = vor.u32 %v3569_v47, %v3033_v45  ;;  %v3533_v56 = vld [vmem:[#allocation5 + $0x4ac] sm:$0xf0]  ;;  %v2478_v38 = vor.u32 %v3427_v30, %v2475_v31  ;;  %v3391_v40 = vld [vmem:[#allocation5 + $0x44] sm:$0xf] }
  0x3d   :  { %1354 = vmatpush.bf16.msrb.mxu2 %v2414_v42  ;;  %v3017_v57 = vld [vmem:[#allocation5 + $0x5a0] sm:$0xf]  ;;  %v3565_v58 = vld [vmem:[#allocation5 + $0x5ac] sm:$0xf0]  ;;  %v2890_v0 = vor.u32 %v3533_v56, %v2889_v53  ;;  %1323 = vmatmul.bf16.vlgmr.msra.gmra.mxu3 %v3894_v15  ;;  %v2331_v41 = vld [vmem:[#allocation5 + $0x50] sm:$0xf0] }
  0x3e   :  { %1367 = vmatpush.bf16.msrb.mxu3 %v2542_v46  ;;  %v3018_v1 = vor.u32 %v3565_v58, %v3017_v57  ;;  %v2873_v2 = vld [vmem:[#allocation5 + $0x480] sm:$0xf]  ;;  %v102_v4 = vld [vmem:[#allocation2] sm:$0xff]  ;;  %v3423_v42 = vld [vmem:[#allocation5 + $0x144] sm:$0xf]  ;;  %v2334_v46 = vor.u32 %v3391_v40, %v2331_v41 }
  0x3f   :  { %1329 = vmatpush.bf16.msrb.mxu0 %v2906_v52  ;;  %v104_v3 = vld [vmem:[#allocation2 + $0x10] sm:$0xff]  ;;  %v3529_v6 = vld [vmem:[#allocation5 + $0x48c] sm:$0xf0]  ;;  %v3892_v9 = vpack.c.bf16 %v102_v4, %v102_v4  ;;  %v2459_v43 = vld [vmem:[#allocation5 + $0x150] sm:$0xf0] }
  0x40   :  { %1342 = vmatpush.bf16.msrb.mxu1 %v3034_v54  ;;  %v3001_v7 = vld [vmem:[#allocation5 + $0x580] sm:$0xf]  ;;  %v3890_v8 = vpack.c.bf16 %v104_v3, %v104_v3  ;;  %v3561_v12 = vld [vmem:[#allocation5 + $0x58c] sm:$0xf0]  ;;  %v2874_v18 = vor.u32 %v3529_v6, %v2873_v2  ;;  %v2462_v50 = vor.u32 %v3423_v42, %v2459_v43  ;;  %v3387_v52 = vld [vmem:[#allocation5 + $0x24] sm:$0xf] }
  0x41   :  { %1355 = vmatpush.bf16.msrb.mxu2 %v2398_v55  ;;  %1284 = vmatmul.bf16.vlgmr.msra.gmra.mxu0 %v3892_v9  ;;  %v3002_v20 = vor.u32 %v3561_v12, %v3001_v7  ;;  %v2857_v22 = vld [vmem:[#allocation5 + $0x460] sm:$0xf]  ;;  %v3525_v23 = vld [vmem:[#allocation5 + $0x46c] sm:$0xf0]  ;;  %v2315_v53 = vld [vmem:[#allocation5 + $0x30] sm:$0xf0] }
  0x42   :  { %1368 = vmatpush.bf16.msrb.mxu3 %v2526_v59  ;;  %1310 = vmatmul.bf16.vlgmr.msra.gmra.mxu2 %v3890_v8  ;;  %v2985_v24 = vld [vmem:[#allocation5 + $0x560] sm:$0xf]  ;;  %v3557_v27 = vld [vmem:[#allocation5 + $0x56c] sm:$0xf0]  ;;  %v2858_v32 = vor.u32 %v3525_v23, %v2857_v22  ;;  %v3419_v54 = vld [vmem:[#allocation5 + $0x124] sm:$0xf]  ;;  %v2318_v60 = vor.u32 %v3387_v52, %v2315_v53 }
  0x43   :  { %1330 = vmatpush.bf16.msrb.mxu0 %v2890_v0  ;;  %v2986_v33 = vor.u32 %v3557_v27, %v2985_v24  ;;  %v2841_v35 = vld [vmem:[#allocation5 + $0x440] sm:$0xf]  ;;  %v3521_v36 = vld [vmem:[#allocation5 + $0x44c] sm:$0xf0]  ;;  %v2443_v55 = vld [vmem:[#allocation5 + $0x130] sm:$0xf0] }
  0x44   :  { %1343 = vmatpush.bf16.msrb.mxu1 %v3018_v1  ;;  %v2969_v37 = vld [vmem:[#allocation5 + $0x540] sm:$0xf]  ;;  %v3553_v39 = vld [vmem:[#allocation5 + $0x54c] sm:$0xf0]  ;;  %v2842_v44 = vor.u32 %v3521_v36, %v2841_v35  ;;  %v3383_v63 = vld [vmem:[#allocation5 + $0x4] sm:$0xf]  ;;  %v2446_v0 = vor.u32 %v3419_v54, %v2443_v55 }
  0x45   :  { %1356 = vmatpush.bf16.msrb.mxu2 %v2382_v5  ;;  %v2970_v45 = vor.u32 %v3553_v39, %v2969_v37  ;;  %v2825_v47 = vld [vmem:[#allocation5 + $0x420] sm:$0xf]  ;;  %v3517_v48 = vld [vmem:[#allocation5 + $0x42c] sm:$0xf0]  ;;  %v2299_v1 = vld [vmem:[#allocation5 + $0x10] sm:$0xf0] }
  0x46   :  { %1369 = vmatpush.bf16.msrb.mxu3 %v2510_v11  ;;  %v2953_v49 = vld [vmem:[#allocation5 + $0x520] sm:$0xf]  ;;  %v3549_v51 = vld [vmem:[#allocation5 + $0x52c] sm:$0xf0]  ;;  %v2826_v56 = vor.u32 %v3517_v48, %v2825_v47  ;;  %v3415_v2 = vld [vmem:[#allocation5 + $0x104] sm:$0xf]  ;;  %v2302_v14 = vor.u32 %v3383_v63, %v2299_v1 }
  0x47   :  { %1331 = vmatpush.bf16.msrb.mxu0 %v2874_v18  ;;  %v2809_v57 = vld [vmem:[#allocation5 + $0x400] sm:$0xf]  ;;  %v3513_v58 = vld [vmem:[#allocation5 + $0x40c] sm:$0xf0]  ;;  %v2954_v59 = vor.u32 %v3549_v51, %v2953_v49  ;;  %v2427_v3 = vld [vmem:[#allocation5 + $0x110] sm:$0xf0] }
  0x48   :  { %1344 = vmatpush.bf16.msrb.mxu1 %v3002_v20  ;;  %v2937_v61 = vld [vmem:[#allocation5 + $0x500] sm:$0xf]  ;;  %v3545_v62 = vld [vmem:[#allocation5 + $0x50c] sm:$0xf0]  ;;  %v3475_v4 = vld [vmem:[#allocation5 + $0x2e4] sm:$0xf]  ;;  %v2810_v7 = vor.u32 %v3513_v58, %v2809_v57  ;;  %v2430_v19 = vor.u32 %v3415_v2, %v2427_v3 }
  0x49   :  { %1357 = vmatpush.bf16.msrb.mxu2 %v2366_v21  ;;  %v2667_v5 = vld [vmem:[#allocation5 + $0x2f0] sm:$0xf0]  ;;  %v3507_v6 = vld [vmem:[#allocation5 + $0x3e4] sm:$0xf]  ;;  %v2938_v13 = vor.u32 %v3545_v62, %v2937_v61  ;;  %v107_v21 = vld [vmem:[#allocation2 + $0x28] sm:$0xff] }
  0x4a   :  { %1370 = vmatpush.bf16.msrb.mxu3 %v2494_v26  ;;  %v2795_v10 = vld [vmem:[#allocation5 + $0x3f0] sm:$0xf0]  ;;  %v3539_v11 = vld [vmem:[#allocation5 + $0x4e4] sm:$0xf]  ;;  %v2670_v20 = vor.u32 %v3475_v4, %v2667_v5  ;;  %v3904_v35 = vpack.c.bf16 %v107_v21, %v107_v21 }
  0x4b   :  { %1332 = vmatpush.bf16.msrb.mxu0 %v2858_v32  ;;  %v2923_v12 = vld [vmem:[#allocation5 + $0x4f0] sm:$0xf0]  ;;  %v3571_v16 = vld [vmem:[#allocation5 + $0x5e4] sm:$0xf]  ;;  %v2798_v22 = vor.u32 %v3507_v6, %v2795_v10 }
  0x4c   :  { %1345 = vmatpush.bf16.msrb.mxu1 %v2986_v33  ;;  %v3051_v17 = vld [vmem:[#allocation5 + $0x5f0] sm:$0xf0]  ;;  %v2926_v23 = vor.u32 %v3539_v11, %v2923_v12  ;;  %v3471_v24 = vld [vmem:[#allocation5 + $0x2c4] sm:$0xf] }
  0x4d   :  { %1358 = vmatpush.bf16.msrb.mxu2 %v2350_v34  ;;  %v106_v18 = vld [vmem:[#allocation2 + $0x20] sm:$0xff]  ;;  %v3503_v27 = vld [vmem:[#allocation5 + $0x3c4] sm:$0xf]  ;;  %v3054_v28 = vor.u32 %v3571_v16, %v3051_v17 }
  0x4e   :  { %1371 = vmatpush.bf16.msrb.mxu3 %v2478_v38  ;;  %v2651_v26 = vld [vmem:[#allocation5 + $0x2d0] sm:$0xf0]  ;;  %v3535_v30 = vld [vmem:[#allocation5 + $0x4c4] sm:$0xf]  ;;  %v3902_v32 = vpack.c.bf16 %v106_v18, %v106_v18 }
  0x4f   :  { %1333 = vmatpush.bf16.msrb.mxu0 %v2842_v44  ;;  %v2779_v29 = vld [vmem:[#allocation5 + $0x3d0] sm:$0xf0]  ;;  %v3567_v33 = vld [vmem:[#allocation5 + $0x5c4] sm:$0xf]  ;;  %v2654_v36 = vor.u32 %v3471_v24, %v2651_v26 }
  0x50   :  { %1346 = vmatpush.bf16.msrb.mxu1 %v2970_v45  ;;  %v2907_v31 = vld [vmem:[#allocation5 + $0x4d0] sm:$0xf0]  ;;  %v2782_v37 = vor.u32 %v3503_v27, %v2779_v29  ;;  %v3467_v39 = vld [vmem:[#allocation5 + $0x2a4] sm:$0xf] }
  0x51   :  { %1359 = vmatpush.bf16.msrb.mxu2 %v2334_v46  ;;  %v3035_v34 = vld [vmem:[#allocation5 + $0x5d0] sm:$0xf0]  ;;  %v2910_v38 = vor.u32 %v3535_v30, %v2907_v31  ;;  %v3499_v41 = vld [vmem:[#allocation5 + $0x3a4] sm:$0xf] }
  0x52   :  { %1372 = vmatpush.bf16.msrb.mxu3 %v2462_v50  ;;  %v2635_v40 = vld [vmem:[#allocation5 + $0x2b0] sm:$0xf0]  ;;  %v3038_v42 = vor.u32 %v3567_v33, %v3035_v34  ;;  %v3531_v44 = vld [vmem:[#allocation5 + $0x4a4] sm:$0xf] }
  0x53   :  { %1334 = vmatpush.bf16.msrb.mxu0 %v2826_v56  ;;  %v2763_v43 = vld [vmem:[#allocation5 + $0x3b0] sm:$0xf0]  ;;  %v3563_v46 = vld [vmem:[#allocation5 + $0x5a4] sm:$0xf]  ;;  %v2638_v48 = vor.u32 %v3467_v39, %v2635_v40 }
  0x54   :  { %1347 = vmatpush.bf16.msrb.mxu1 %v2954_v59  ;;  %v2891_v45 = vld [vmem:[#allocation5 + $0x4b0] sm:$0xf0]  ;;  %v2766_v49 = vor.u32 %v3499_v41, %v2763_v43  ;;  %v3463_v51 = vld [vmem:[#allocation5 + $0x284] sm:$0xf] }
  0x55   :  { %1360 = vmatpush.bf16.msrb.mxu2 %v2318_v60  ;;  %v3019_v47 = vld [vmem:[#allocation5 + $0x5b0] sm:$0xf0]  ;;  %v2894_v50 = vor.u32 %v3531_v44, %v2891_v45  ;;  %v3495_v53 = vld [vmem:[#allocation5 + $0x384] sm:$0xf] }
  0x56   :  { %1373 = vmatpush.bf16.msrb.mxu3 %v2446_v0  ;;  %v2619_v52 = vld [vmem:[#allocation5 + $0x290] sm:$0xf0]  ;;  %v3022_v54 = vor.u32 %v3563_v46, %v3019_v47  ;;  %v3527_v56 = vld [vmem:[#allocation5 + $0x484] sm:$0xf] }
  0x57   :  { %1335 = vmatpush.bf16.msrb.mxu0 %v2810_v7  ;;  %v2747_v55 = vld [vmem:[#allocation5 + $0x390] sm:$0xf0]  ;;  %v3559_v58 = vld [vmem:[#allocation5 + $0x584] sm:$0xf]  ;;  %v2622_v60 = vor.u32 %v3463_v51, %v2619_v52  ;;  %v3414_v51 = vld [vmem:[#allocation5 + $0xf4] sm:$0xf0] }
  0x58   :  { %1348 = vmatpush.bf16.msrb.mxu1 %v2938_v13  ;;  %v2875_v57 = vld [vmem:[#allocation5 + $0x490] sm:$0xf0]  ;;  %v2750_v61 = vor.u32 %v3495_v53, %v2747_v55  ;;  %v3459_v63 = vld [vmem:[#allocation5 + $0x264] sm:$0xf]  ;;  %v2545_v52 = vld [vmem:[#allocation5 + $0x1e8] sm:$0xf] }
  0x59   :  { %1361 = vmatpush.bf16.msrb.mxu2 %v2302_v14  ;;  %v3003_v59 = vld [vmem:[#allocation5 + $0x590] sm:$0xf0]  ;;  %v2878_v62 = vor.u32 %v3527_v56, %v2875_v57  ;;  %v3491_v1 = vld [vmem:[#allocation5 + $0x364] sm:$0xf]  ;;  %v2673_v55 = vld [vmem:[#allocation5 + $0x2e8] sm:$0xf] }
  0x5a   :  { %1374 = vmatpush.bf16.msrb.mxu3 %v2430_v19  ;;  %1336 = vmatmul.bf16.vlgmr.msrb.gmra.mxu0 %v3902_v32  ;;  %v2603_v0 = vld [vmem:[#allocation5 + $0x270] sm:$0xf0]  ;;  %v3006_v2 = vor.u32 %v3559_v58, %v3003_v59  ;;  %v3523_v4 = vld [vmem:[#allocation5 + $0x464] sm:$0xf]  ;;  %v3478_v56 = vld [vmem:[#allocation5 + $0x2f4] sm:$0xf0] }
  0x5b   :  { %1380 = vmatpush.bf16.msra.mxu0 %v2670_v20  ;;  %1349 = vmatmul.bf16.vlgmr.msrb.gmra.mxu1 %v3904_v35  ;;  %v2731_v3 = vld [vmem:[#allocation5 + $0x370] sm:$0xf0]  ;;  %v3555_v6 = vld [vmem:[#allocation5 + $0x564] sm:$0xf]  ;;  %v2606_v10 = vor.u32 %v3459_v63, %v2603_v0  ;;  %v2801_v59 = vld [vmem:[#allocation5 + $0x3e8] sm:$0xf]  ;;  %v2674_v0 = vor.u32 %v3478_v56, %v2673_v55 }
  0x5c   :  { %1393 = vmatpush.bf16.msra.mxu1 %v2798_v22  ;;  %1362 = vmatmul.bf16.vlgmr.msrb.gmra.mxu2 %v3892_v9  ;;  %v2859_v5 = vld [vmem:[#allocation5 + $0x470] sm:$0xf0]  ;;  %v2734_v11 = vor.u32 %v3491_v1, %v2731_v3  ;;  %v3455_v13 = vld [vmem:[#allocation5 + $0x244] sm:$0xf]  ;;  %v2401_v1 = vld [vmem:[#allocation5 + $0xc8] sm:$0xf] }
  0x5d   :  { %1406 = vmatpush.bf16.msra.mxu2 %v2926_v23  ;;  %1375 = vmatmul.bf16.vlgmr.msrb.gmra.mxu3 %v3899_v25  ;;  %v2987_v7 = vld [vmem:[#allocation5 + $0x570] sm:$0xf0]  ;;  %v2862_v12 = vor.u32 %v3523_v4, %v2859_v5  ;;  %v3487_v16 = vld [vmem:[#allocation5 + $0x344] sm:$0xf]  ;;  %v2529_v3 = vld [vmem:[#allocation5 + $0x1c8] sm:$0xf] }
  0x5e   :  { %1419 = vmatpush.bf16.msra.mxu3 %v3054_v28  ;;  %v2587_v14 = vld [vmem:[#allocation5 + $0x250] sm:$0xf0]  ;;  %v2990_v17 = vor.u32 %v3555_v6, %v2987_v7  ;;  %v3519_v19 = vld [vmem:[#allocation5 + $0x444] sm:$0xf]  ;;  %v3442_v5 = vld [vmem:[#allocation5 + $0x1d4] sm:$0xf0] }
  0x5f   :  { %1381 = vmatpush.bf16.msra.mxu0 %v2654_v36  ;;  %v2715_v18 = vld [vmem:[#allocation5 + $0x350] sm:$0xf0]  ;;  %v3551_v21 = vld [vmem:[#allocation5 + $0x544] sm:$0xf]  ;;  %v2590_v23 = vor.u32 %v3455_v13, %v2587_v14  ;;  %v2657_v6 = vld [vmem:[#allocation5 + $0x2c8] sm:$0xf]  ;;  %v2530_v13 = vor.u32 %v3442_v5, %v2529_v3 }
  0x60   :  { %1394 = vmatpush.bf16.msra.mxu1 %v2782_v37  ;;  %v2843_v20 = vld [vmem:[#allocation5 + $0x450] sm:$0xf0]  ;;  %v2718_v24 = vor.u32 %v3487_v16, %v2715_v18  ;;  %v3451_v27 = vld [vmem:[#allocation5 + $0x224] sm:$0xf]  ;;  %v3474_v7 = vld [vmem:[#allocation5 + $0x2d4] sm:$0xf0] }
  0x61   :  { %1407 = vmatpush.bf16.msra.mxu2 %v2910_v38  ;;  %v2971_v22 = vld [vmem:[#allocation5 + $0x550] sm:$0xf0]  ;;  %v2846_v26 = vor.u32 %v3519_v19, %v2843_v20  ;;  %v3483_v29 = vld [vmem:[#allocation5 + $0x324] sm:$0xf]  ;;  %v2658_v14 = vor.u32 %v3474_v7, %v2657_v6  ;;  %v2385_v16 = vld [vmem:[#allocation5 + $0xa8] sm:$0xf] }
  0x62   :  { %1420 = vmatpush.bf16.msra.mxu3 %v3038_v42  ;;  %v2571_v28 = vld [vmem:[#allocation5 + $0x230] sm:$0xf0]  ;;  %v2974_v30 = vor.u32 %v3551_v21, %v2971_v22  ;;  %v3515_v33 = vld [vmem:[#allocation5 + $0x424] sm:$0xf]  ;;  %v2513_v18 = vld [vmem:[#allocation5 + $0x1a8] sm:$0xf] }
  0x63   :  { %1382 = vmatpush.bf16.msra.mxu0 %v2638_v48  ;;  %v2699_v31 = vld [vmem:[#allocation5 + $0x330] sm:$0xf0]  ;;  %v3547_v36 = vld [vmem:[#allocation5 + $0x524] sm:$0xf]  ;;  %v2574_v38 = vor.u32 %v3451_v27, %v2571_v28  ;;  %v3438_v20 = vld [vmem:[#allocation5 + $0x1b4] sm:$0xf0] }
  0x64   :  { %1395 = vmatpush.bf16.msra.mxu1 %v2766_v49  ;;  %v2827_v34 = vld [vmem:[#allocation5 + $0x430] sm:$0xf0]  ;;  %v3447_v39 = vld [vmem:[#allocation5 + $0x204] sm:$0xf]  ;;  %v2702_v41 = vor.u32 %v3483_v29, %v2699_v31  ;;  %v2641_v21 = vld [vmem:[#allocation5 + $0x2a8] sm:$0xf]  ;;  %v2514_v27 = vor.u32 %v3438_v20, %v2513_v18 }
  0x65   :  { %1408 = vmatpush.bf16.msra.mxu2 %v2894_v50  ;;  %v2955_v37 = vld [vmem:[#allocation5 + $0x530] sm:$0xf0]  ;;  %v2830_v42 = vor.u32 %v3515_v33, %v2827_v34  ;;  %v3479_v43 = vld [vmem:[#allocation5 + $0x304] sm:$0xf]  ;;  %v2417_v50 = vld [vmem:[#allocation5 + $0xe8] sm:$0xf] }
  0x66   :  { %1421 = vmatpush.bf16.msra.mxu3 %v3022_v54  ;;  %v2555_v40 = vld [vmem:[#allocation5 + $0x210] sm:$0xf0]  ;;  %v3511_v45 = vld [vmem:[#allocation5 + $0x404] sm:$0xf]  ;;  %v2958_v46 = vor.u32 %v3547_v36, %v2955_v37  ;;  %v3446_v54 = vld [vmem:[#allocation5 + $0x1f4] sm:$0xf0] }
  0x67   :  { %1383 = vmatpush.bf16.msra.mxu0 %v2622_v60  ;;  %v2683_v44 = vld [vmem:[#allocation5 + $0x310] sm:$0xf0]  ;;  %v3543_v48 = vld [vmem:[#allocation5 + $0x504] sm:$0xf]  ;;  %v2558_v53 = vor.u32 %v3447_v39, %v2555_v40  ;;  %v3510_v60 = vld [vmem:[#allocation5 + $0x3f4] sm:$0xf0]  ;;  %v2546_v63 = vor.u32 %v3446_v54, %v2545_v52 }
  0x68   :  { %1396 = vmatpush.bf16.msra.mxu1 %v2750_v61  ;;  %v2811_v47 = vld [vmem:[#allocation5 + $0x410] sm:$0xf0]  ;;  %v2686_v57 = vor.u32 %v3479_v43, %v2683_v44  ;;  %v2802_v4 = vor.u32 %v3510_v60, %v2801_v59  ;;  %v3470_v22 = vld [vmem:[#allocation5 + $0x2b4] sm:$0xf0]  ;;  %v2369_v29 = vld [vmem:[#allocation5 + $0x88] sm:$0xf] }
  0x69   :  { %1409 = vmatpush.bf16.msra.mxu2 %v2878_v62  ;;  %v2939_v49 = vld [vmem:[#allocation5 + $0x510] sm:$0xf0]  ;;  %v2814_v58 = vor.u32 %v3511_v45, %v2811_v47  ;;  %v2418_v62 = vor.u32 %v3414_v51, %v2417_v50  ;;  %v2642_v28 = vor.u32 %v3470_v22, %v2641_v21  ;;  %v2497_v31 = vld [vmem:[#allocation5 + $0x188] sm:$0xf]  ;;  %v3434_v34 = vld [vmem:[#allocation5 + $0x194] sm:$0xf0] }
  0x6a   :  { %1422 = vmatpush.bf16.msra.mxu3 %v3006_v2  ;;  %v2942_v61 = vor.u32 %v3543_v48, %v2939_v49  ;;  %v3410_v2 = vld [vmem:[#allocation5 + $0xd4] sm:$0xf0]  ;;  %v2625_v36 = vld [vmem:[#allocation5 + $0x288] sm:$0xf] }
  0x6b   :  { %1384 = vmatpush.bf16.msra.mxu0 %v2606_v10  ;;  %v2785_v10 = vld [vmem:[#allocation5 + $0x3c8] sm:$0xf]  ;;  %v3466_v37 = vld [vmem:[#allocation5 + $0x294] sm:$0xf0] }
  0x6c   :  { %1397 = vmatpush.bf16.msra.mxu1 %v2734_v11  ;;  %v3506_v11 = vld [vmem:[#allocation5 + $0x3d4] sm:$0xf0]  ;;  %v2353_v43 = vld [vmem:[#allocation5 + $0x68] sm:$0xf] }
  0x6d   :  { %1410 = vmatpush.bf16.msra.mxu2 %v2862_v12  ;;  %v2402_v12 = vor.u32 %v3410_v2, %v2401_v1  ;;  %v2786_v19 = vor.u32 %v3506_v11, %v2785_v10  ;;  %v3498_v39 = vld [vmem:[#allocation5 + $0x394] sm:$0xf0]  ;;  %v2481_v45 = vld [vmem:[#allocation5 + $0x168] sm:$0xf] }
  0x6e   :  { %1423 = vmatpush.bf16.msra.mxu3 %v2990_v17  ;;  %v3406_v17 = vld [vmem:[#allocation5 + $0xb4] sm:$0xf0]  ;;  %v2609_v48 = vld [vmem:[#allocation5 + $0x268] sm:$0xf] }
  0x6f   :  { %1385 = vmatpush.bf16.msra.mxu0 %v2590_v23  ;;  %v2769_v23 = vld [vmem:[#allocation5 + $0x3a8] sm:$0xf]  ;;  %v3398_v44 = vld [vmem:[#allocation5 + $0x74] sm:$0xf0] }
  0x70   :  { %1398 = vmatpush.bf16.msra.mxu1 %v2718_v24  ;;  %v3502_v24 = vld [vmem:[#allocation5 + $0x3b4] sm:$0xf0]  ;;  %v2737_v50 = vld [vmem:[#allocation5 + $0x368] sm:$0xf]  ;;  %v2354_v52 = vor.u32 %v3398_v44, %v2353_v43 }
  0x71   :  { %1411 = vmatpush.bf16.msra.mxu2 %v2846_v26  ;;  %v2386_v26 = vor.u32 %v3406_v17, %v2385_v16  ;;  %v2770_v33 = vor.u32 %v3502_v24, %v2769_v23  ;;  %v3430_v47 = vld [vmem:[#allocation5 + $0x174] sm:$0xf0]  ;;  %v2337_v55 = vld [vmem:[#allocation5 + $0x48] sm:$0xf] }
  0x72   :  { %1424 = vmatpush.bf16.msra.mxu3 %v2974_v30  ;;  %v3402_v30 = vld [vmem:[#allocation5 + $0x94] sm:$0xf0]  ;;  %v2593_v60 = vld [vmem:[#allocation5 + $0x248] sm:$0xf] }
  0x73   :  { %1386 = vmatpush.bf16.msra.mxu0 %v2574_v38  ;;  %v2753_v38 = vld [vmem:[#allocation5 + $0x388] sm:$0xf]  ;;  %v2370_v40 = vor.u32 %v3402_v30, %v2369_v29  ;;  %v3462_v49 = vld [vmem:[#allocation5 + $0x274] sm:$0xf0] }
  0x74   :  { %1399 = vmatpush.bf16.msra.mxu1 %v2702_v41  ;;  %v2498_v41 = vor.u32 %v3434_v34, %v2497_v31  ;;  %v3494_v51 = vld [vmem:[#allocation5 + $0x374] sm:$0xf0]  ;;  %v2610_v54 = vor.u32 %v3462_v49, %v2609_v48  ;;  %v2321_v3 = vld [vmem:[#allocation5 + $0x28] sm:$0xf]  ;;  %v3412_v34 = vld [vmem:[#allocation5 + $0xec] sm:$0xf] }
  0x75   :  { %1412 = vmatpush.bf16.msra.mxu2 %v2830_v42  ;;  %v2626_v42 = vor.u32 %v3466_v37, %v2625_v36  ;;  %v3394_v56 = vld [vmem:[#allocation5 + $0x54] sm:$0xf0]  ;;  %v2449_v5 = vld [vmem:[#allocation5 + $0x128] sm:$0xf]  ;;  %v2419_v36 = vld [vmem:[#allocation5 + $0xf8] sm:$0xf0] }
  0x76   :  { %1425 = vmatpush.bf16.msra.mxu3 %v2958_v46  ;;  %v2754_v46 = vor.u32 %v3498_v39, %v2753_v38  ;;  %v3426_v59 = vld [vmem:[#allocation5 + $0x154] sm:$0xf0]  ;;  %v2577_v10 = vld [vmem:[#allocation5 + $0x228] sm:$0xf]  ;;  %v3444_v39 = vld [vmem:[#allocation5 + $0x1ec] sm:$0xf]  ;;  %v2422_v44 = vor.u32 %v3412_v34, %v2419_v36 }
  0x77   :  { %1387 = vmatpush.bf16.msra.mxu0 %v2558_v53  ;;  %v2482_v53 = vor.u32 %v3430_v47, %v2481_v45  ;;  %v3422_v7 = vld [vmem:[#allocation5 + $0x134] sm:$0xf0]  ;;  %v2305_v16 = vld [vmem:[#allocation5 + $0x8] sm:$0xf] }
  0x78   :  { %1400 = vmatpush.bf16.msra.mxu1 %v2686_v57  ;;  %v2465_v57 = vld [vmem:[#allocation5 + $0x148] sm:$0xf]  ;;  %v3454_v11 = vld [vmem:[#allocation5 + $0x234] sm:$0xf0]  ;;  %v2450_v18 = vor.u32 %v3422_v7, %v2449_v5 }
  0x79   :  { %1413 = vmatpush.bf16.msra.mxu2 %v2814_v58  ;;  %v2738_v58 = vor.u32 %v3494_v51, %v2737_v50  ;;  %v2466_v1 = vor.u32 %v3426_v59, %v2465_v57  ;;  %v3386_v17 = vld [vmem:[#allocation5 + $0x14] sm:$0xf0]  ;;  %v2433_v20 = vld [vmem:[#allocation5 + $0x108] sm:$0xf]  ;;  %v3408_v50 = vld [vmem:[#allocation5 + $0xcc] sm:$0xf] }
  0x7a   :  { %1426 = vmatpush.bf16.msra.mxu3 %v2942_v61  ;;  %1388 = vmatmul.bf16.vlgmr.msra.gmra.mxu0 %v3890_v8  ;;  %v3458_v61 = vld [vmem:[#allocation5 + $0x254] sm:$0xf0]  ;;  %v2561_v22 = vld [vmem:[#allocation5 + $0x208] sm:$0xf]  ;;  %v2306_v31 = vor.u32 %v3386_v17, %v2305_v16  ;;  %v2403_v51 = vld [vmem:[#allocation5 + $0xd8] sm:$0xf0] }
  0x7b   :  { %1432 = vmatpush.bf16.msrb.mxu0 %v2418_v62  ;;  %1401 = vmatmul.bf16.vlgmr.msra.gmra.mxu1 %v3894_v15  ;;  %v2721_v62 = vld [vmem:[#allocation5 + $0x348] sm:$0xf]  ;;  %v2594_v2 = vor.u32 %v3458_v61, %v2593_v60  ;;  %v3418_v21 = vld [vmem:[#allocation5 + $0x114] sm:$0xf0]  ;;  %v2499_v16 = vld [vmem:[#allocation5 + $0x198] sm:$0xf0] }
  0x7c   :  { %1445 = vmatpush.bf16.msrb.mxu1 %v2546_v63  ;;  %1414 = vmatmul.bf16.vlgmr.msra.gmra.mxu2 %v3902_v32  ;;  %v3490_v63 = vld [vmem:[#allocation5 + $0x354] sm:$0xf0]  ;;  %v3057_v30 = vld [vmem:[#allocation5 + $0x5e8] sm:$0xf]  ;;  %v2434_v37 = vor.u32 %v3418_v21, %v2433_v20 }
  0x7d   :  { %1458 = vmatpush.bf16.msrb.mxu2 %v2674_v0  ;;  %1427 = vmatmul.bf16.vlgmr.msra.gmra.mxu3 %v3904_v35  ;;  %v2338_v0 = vor.u32 %v3394_v56, %v2337_v55  ;;  %v2722_v6 = vor.u32 %v3490_v63, %v2721_v62  ;;  %v3450_v24 = vld [vmem:[#allocation5 + $0x214] sm:$0xf0]  ;;  %v2913_v45 = vld [vmem:[#allocation5 + $0x4c8] sm:$0xf]  ;;  %v2406_v56 = vor.u32 %v3408_v50, %v2403_v51  ;;  %v3404_v62 = vld [vmem:[#allocation5 + $0xac] sm:$0xf] }
  0x7e   :  { %1471 = vmatpush.bf16.msrb.mxu3 %v2802_v4  ;;  %v3390_v4 = vld [vmem:[#allocation5 + $0x34] sm:$0xf0]  ;;  %v2562_v38 = vor.u32 %v3450_v24, %v2561_v22  ;;  %v3041_v47 = vld [vmem:[#allocation5 + $0x5c8] sm:$0xf]  ;;  %v2387_v63 = vld [vmem:[#allocation5 + $0xb8] sm:$0xf0] }
  0x7f   :  { %1433 = vmatpush.bf16.msrb.mxu0 %v2402_v12  ;;  %v2705_v12 = vld [vmem:[#allocation5 + $0x328] sm:$0xf]  ;;  %v3542_v29 = vld [vmem:[#allocation5 + $0x4f4] sm:$0xf0] }
  0x80   :  { %1446 = vmatpush.bf16.msrb.mxu1 %v2530_v13  ;;  %v3486_v13 = vld [vmem:[#allocation5 + $0x334] sm:$0xf0]  ;;  %v2897_v57 = vld [vmem:[#allocation5 + $0x4a8] sm:$0xf] }
  0x81   :  { %1459 = vmatpush.bf16.msrb.mxu2 %v2658_v14  ;;  %v2322_v14 = vor.u32 %v3390_v4, %v2321_v3  ;;  %v2706_v23 = vor.u32 %v3486_v13, %v2705_v12  ;;  %v3570_v49 = vld [vmem:[#allocation5 + $0x5d4] sm:$0xf0]  ;;  %v3025_v59 = vld [vmem:[#allocation5 + $0x5a8] sm:$0xf]  ;;  %v2390_v4 = vor.u32 %v3404_v62, %v2387_v63  ;;  %v3400_v12 = vld [vmem:[#allocation5 + $0x8c] sm:$0xf] }
  0x82   :  { %1472 = vmatpush.bf16.msrb.mxu3 %v2786_v19  ;;  %v2578_v19 = vor.u32 %v3454_v11, %v2577_v10  ;;  %v3042_v55 = vor.u32 %v3570_v49, %v3041_v47  ;;  %v3566_v61 = vld [vmem:[#allocation5 + $0x5b4] sm:$0xf0]  ;;  %v2881_v5 = vld [vmem:[#allocation5 + $0x488] sm:$0xf]  ;;  %v2371_v13 = vld [vmem:[#allocation5 + $0x98] sm:$0xf0] }
  0x83   :  { %1434 = vmatpush.bf16.msrb.mxu0 %v2386_v26  ;;  %v2689_v26 = vld [vmem:[#allocation5 + $0x308] sm:$0xf]  ;;  %v3026_v3 = vor.u32 %v3566_v61, %v3025_v59  ;;  %v3562_v11 = vld [vmem:[#allocation5 + $0x594] sm:$0xf0]  ;;  %v3384_v63 = vld [vmem:[#allocation5 + $0xc] sm:$0xf] }
  0x84   :  { %1447 = vmatpush.bf16.msrb.mxu1 %v2514_v27  ;;  %v3482_v27 = vld [vmem:[#allocation5 + $0x314] sm:$0xf0]  ;;  %v3009_v7 = vld [vmem:[#allocation5 + $0x588] sm:$0xf] }
  0x85   :  { %1460 = vmatpush.bf16.msrb.mxu2 %v2642_v28  ;;  %v2929_v28 = vld [vmem:[#allocation5 + $0x4e8] sm:$0xf]  ;;  %v3526_v21 = vld [vmem:[#allocation5 + $0x474] sm:$0xf0] }
  0x86   :  { %1473 = vmatpush.bf16.msrb.mxu3 %v2770_v33  ;;  %v3574_v33 = vld [vmem:[#allocation5 + $0x5f4] sm:$0xf0]  ;;  %v2865_v20 = vld [vmem:[#allocation5 + $0x468] sm:$0xf] }
  0x87   :  { %1435 = vmatpush.bf16.msrb.mxu0 %v2370_v40  ;;  %v2547_v40 = vld [vmem:[#allocation5 + $0x1f8] sm:$0xf0]  ;;  %v3058_v43 = vor.u32 %v3574_v33, %v3057_v30  ;;  %v2993_v22 = vld [vmem:[#allocation5 + $0x568] sm:$0xf]  ;;  %v3558_v24 = vld [vmem:[#allocation5 + $0x574] sm:$0xf0]  ;;  %v2866_v30 = vor.u32 %v3526_v21, %v2865_v20 }
  0x88   :  { %1448 = vmatpush.bf16.msrb.mxu1 %v2498_v41  ;;  %v2690_v41 = vor.u32 %v3482_v27, %v2689_v26  ;;  %v2550_v48 = vor.u32 %v3444_v39, %v2547_v40  ;;  %v3396_v26 = vld [vmem:[#allocation5 + $0x6c] sm:$0xf]  ;;  %v2355_v27 = vld [vmem:[#allocation5 + $0x78] sm:$0xf0]  ;;  %v2849_v34 = vld [vmem:[#allocation5 + $0x448] sm:$0xf] }
  0x89   :  { %1461 = vmatpush.bf16.msrb.mxu2 %v2626_v42  ;;  %v2930_v42 = vor.u32 %v3542_v29, %v2929_v28  ;;  %v3428_v28 = vld [vmem:[#allocation5 + $0x16c] sm:$0xf]  ;;  %v2483_v29 = vld [vmem:[#allocation5 + $0x178] sm:$0xf0]  ;;  %v2358_v33 = vor.u32 %v3396_v26, %v2355_v27  ;;  %v3522_v36 = vld [vmem:[#allocation5 + $0x454] sm:$0xf0] }
  0x8a   :  { %1474 = vmatpush.bf16.msrb.mxu3 %v2754_v46  ;;  %v3538_v46 = vld [vmem:[#allocation5 + $0x4d4] sm:$0xf0]  ;;  %v3392_v40 = vld [vmem:[#allocation5 + $0x4c] sm:$0xf]  ;;  %v2833_v47 = vld [vmem:[#allocation5 + $0x428] sm:$0xf] }
  0x8b   :  { %1436 = vmatpush.bf16.msrb.mxu0 %v2354_v52  ;;  %v3440_v52 = vld [vmem:[#allocation5 + $0x1cc] sm:$0xf]  ;;  %v3554_v39 = vld [vmem:[#allocation5 + $0x554] sm:$0xf0]  ;;  %v2961_v49 = vld [vmem:[#allocation5 + $0x528] sm:$0xf] }
  0x8c   :  { %1449 = vmatpush.bf16.msrb.mxu1 %v2482_v53  ;;  %v2531_v53 = vld [vmem:[#allocation5 + $0x1d8] sm:$0xf0]  ;;  %v3550_v51 = vld [vmem:[#allocation5 + $0x534] sm:$0xf0]  ;;  %v2945_v61 = vld [vmem:[#allocation5 + $0x508] sm:$0xf] }
  0x8d   :  { %1462 = vmatpush.bf16.msrb.mxu2 %v2610_v54  ;;  %v2914_v54 = vor.u32 %v3538_v46, %v2913_v45  ;;  %v2534_v60 = vor.u32 %v3440_v52, %v2531_v53  ;;  %v3388_v52 = vld [vmem:[#allocation5 + $0x2c] sm:$0xf]  ;;  %v2323_v53 = vld [vmem:[#allocation5 + $0x38] sm:$0xf0]  ;;  %v2962_v59 = vor.u32 %v3550_v51, %v2961_v49  ;;  %v3546_v62 = vld [vmem:[#allocation5 + $0x514] sm:$0xf0] }
  0x8e   :  { %1475 = vmatpush.bf16.msrb.mxu3 %v2738_v58  ;;  %v3534_v58 = vld [vmem:[#allocation5 + $0x4b4] sm:$0xf0]  ;;  %v2787_v27 = vld [vmem:[#allocation5 + $0x3d8] sm:$0xf0]  ;;  %v3464_v49 = vld [vmem:[#allocation5 + $0x28c] sm:$0xf] }
  0x8f   :  { %1437 = vmatpush.bf16.msrb.mxu0 %v2338_v0  ;;  %v3436_v0 = vld [vmem:[#allocation5 + $0x1ac] sm:$0xf] }
  0x90   :  { %1450 = vmatpush.bf16.msrb.mxu1 %v2466_v1  ;;  %v2515_v1 = vld [vmem:[#allocation5 + $0x1b8] sm:$0xf0]  ;;  %v3496_v51 = vld [vmem:[#allocation5 + $0x38c] sm:$0xf] }
  0x91   :  { %1463 = vmatpush.bf16.msrb.mxu2 %v2594_v2  ;;  %v2898_v2 = vor.u32 %v3534_v58, %v2897_v57  ;;  %v2518_v10 = vor.u32 %v3436_v0, %v2515_v1  ;;  %v2817_v57 = vld [vmem:[#allocation5 + $0x408] sm:$0xf]  ;;  %v3514_v58 = vld [vmem:[#allocation5 + $0x414] sm:$0xf0]  ;;  %v2307_v1 = vld [vmem:[#allocation5 + $0x18] sm:$0xf0] }
  0x92   :  { %1476 = vmatpush.bf16.msrb.mxu3 %v2722_v6  ;;  %v3530_v6 = vld [vmem:[#allocation5 + $0x494] sm:$0xf0] }
  0x93   :  { %1438 = vmatpush.bf16.msrb.mxu0 %v2322_v14  ;;  %v3432_v14 = vld [vmem:[#allocation5 + $0x18c] sm:$0xf]  ;;  %v2882_v17 = vor.u32 %v3530_v6, %v2881_v5  ;;  %v2675_v5 = vld [vmem:[#allocation5 + $0x2f8] sm:$0xf0] }
  0x94   :  { %1451 = vmatpush.bf16.msrb.mxu1 %v2450_v18  ;;  %v3010_v18 = vor.u32 %v3562_v11, %v3009_v7  ;;  %v3508_v6 = vld [vmem:[#allocation5 + $0x3ec] sm:$0xf]  ;;  %v2818_v7 = vor.u32 %v3514_v58, %v2817_v57 }
  0x95   :  { %1464 = vmatpush.bf16.msrb.mxu2 %v2578_v19  ;;  %v2374_v19 = vor.u32 %v3400_v12, %v2371_v13  ;;  %v3540_v11 = vld [vmem:[#allocation5 + $0x4ec] sm:$0xf]  ;;  %v2931_v12 = vld [vmem:[#allocation5 + $0x4f8] sm:$0xf0]  ;;  %v2946_v13 = vor.u32 %v3546_v62, %v2945_v61 }
  0x96   :  { %1477 = vmatpush.bf16.msrb.mxu3 %v2706_v23  ;;  %v2502_v23 = vor.u32 %v3432_v14, %v2499_v16  ;;  %v2310_v14 = vor.u32 %v3384_v63, %v2307_v1  ;;  %v3572_v16 = vld [vmem:[#allocation5 + $0x5ec] sm:$0xf]  ;;  %v2934_v21 = vor.u32 %v3540_v11, %v2931_v12  ;;  %v2739_v63 = vld [vmem:[#allocation5 + $0x378] sm:$0xf0] }
  0x97   :  { %1439 = vmatpush.bf16.msrb.mxu0 %v2306_v31  ;;  %v2994_v31 = vor.u32 %v3558_v24, %v2993_v22  ;;  %v3472_v22 = vld [vmem:[#allocation5 + $0x2cc] sm:$0xf]  ;;  %v2867_v1 = vld [vmem:[#allocation5 + $0x478] sm:$0xf0] }
  0x98   :  { %1452 = vmatpush.bf16.msrb.mxu1 %v2434_v37  ;;  %v2977_v37 = vld [vmem:[#allocation5 + $0x548] sm:$0xf]  ;;  %v3504_v24 = vld [vmem:[#allocation5 + $0x3cc] sm:$0xf]  ;;  %v2595_v11 = vld [vmem:[#allocation5 + $0x258] sm:$0xf0] }
  0x99   :  { %1465 = vmatpush.bf16.msrb.mxu2 %v2562_v38  ;;  %v2486_v38 = vor.u32 %v3428_v28, %v2483_v29  ;;  %v2978_v45 = vor.u32 %v3554_v39, %v2977_v37  ;;  %v3536_v28 = vld [vmem:[#allocation5 + $0x4cc] sm:$0xf]  ;;  %v2915_v29 = vld [vmem:[#allocation5 + $0x4d8] sm:$0xf0] }
  0x9a   :  { %1478 = vmatpush.bf16.msrb.mxu3 %v2690_v41  ;;  %1440 = vmatmul.bf16.vlgmr.msrb.gmra.mxu0 %v3892_v9  ;;  %v2339_v41 = vld [vmem:[#allocation5 + $0x58] sm:$0xf0]  ;;  %v3468_v37 = vld [vmem:[#allocation5 + $0x2ac] sm:$0xf] }
  0x9b   :  { %1484 = vmatpush.bf16.msra.mxu0 %v2930_v42  ;;  %1453 = vmatmul.bf16.vlgmr.msrb.gmra.mxu1 %v3899_v25  ;;  %v3424_v42 = vld [vmem:[#allocation5 + $0x14c] sm:$0xf]  ;;  %v2342_v46 = vor.u32 %v3392_v40, %v2339_v41  ;;  %v2771_v41 = vld [vmem:[#allocation5 + $0x3b8] sm:$0xf0] }
  0x9c   :  { %1497 = vmatpush.bf16.msra.mxu1 %v3058_v43  ;;  %1466 = vmatmul.bf16.vlgmr.msrb.gmra.mxu2 %v3890_v8  ;;  %v2467_v43 = vld [vmem:[#allocation5 + $0x158] sm:$0xf0]  ;;  %v3500_v39 = vld [vmem:[#allocation5 + $0x3ac] sm:$0xf] }
  0x9d   :  { %1510 = vmatpush.bf16.msra.mxu2 %v2422_v44  ;;  %1479 = vmatmul.bf16.vlgmr.msrb.gmra.mxu3 %v3894_v15  ;;  %v2850_v44 = vor.u32 %v3522_v36, %v2849_v34  ;;  %v2470_v50 = vor.u32 %v3424_v42, %v2467_v43  ;;  %v2790_v34 = vor.u32 %v3504_v24, %v2787_v27  ;;  %v3532_v42 = vld [vmem:[#allocation5 + $0x4ac] sm:$0xf]  ;;  %v2899_v43 = vld [vmem:[#allocation5 + $0x4b8] sm:$0xf0] }
  0x9e   :  { %1523 = vmatpush.bf16.msra.mxu3 %v2550_v48  ;;  %v3518_v48 = vld [vmem:[#allocation5 + $0x434] sm:$0xf0]  ;;  %v2918_v36 = vor.u32 %v3536_v28, %v2915_v29  ;;  %v3492_v61 = vld [vmem:[#allocation5 + $0x36c] sm:$0xf]  ;;  %v2707_v29 = vld [vmem:[#allocation5 + $0x338] sm:$0xf0] }
  0x9f   :  { %1485 = vmatpush.bf16.msra.mxu0 %v2914_v54  ;;  %v3420_v54 = vld [vmem:[#allocation5 + $0x12c] sm:$0xf] }
  0xa0   :  { %1498 = vmatpush.bf16.msra.mxu1 %v3042_v55  ;;  %v2451_v55 = vld [vmem:[#allocation5 + $0x138] sm:$0xf0]  ;;  %v3488_v12 = vld [vmem:[#allocation5 + $0x34c] sm:$0xf] }
  0xa1   :  { %1511 = vmatpush.bf16.msra.mxu2 %v2406_v56  ;;  %v2834_v56 = vor.u32 %v3518_v48, %v2833_v47  ;;  %v2454_v0 = vor.u32 %v3420_v54, %v2451_v55  ;;  %v2774_v47 = vor.u32 %v3500_v39, %v2771_v41  ;;  %v2902_v48 = vor.u32 %v3532_v42, %v2899_v43  ;;  %v3528_v54 = vld [vmem:[#allocation5 + $0x48c] sm:$0xf]  ;;  %v2883_v55 = vld [vmem:[#allocation5 + $0x498] sm:$0xf0] }
  0xa2   :  { %1524 = vmatpush.bf16.msra.mxu3 %v2534_v60  ;;  %v2326_v60 = vor.u32 %v3388_v52, %v2323_v53  ;;  %v2755_v53 = vld [vmem:[#allocation5 + $0x398] sm:$0xf0]  ;;  %v3452_v24 = vld [vmem:[#allocation5 + $0x22c] sm:$0xf] }
  0xa3   :  { %1486 = vmatpush.bf16.msra.mxu0 %v2898_v2  ;;  %v3416_v2 = vld [vmem:[#allocation5 + $0x10c] sm:$0xf]  ;;  %v2758_v58 = vor.u32 %v3496_v51, %v2755_v53  ;;  %v2563_v43 = vld [vmem:[#allocation5 + $0x218] sm:$0xf0]  ;;  %v3121_v51 = vld [vmem:[#allocation7 + $0x70] sm:$0xf] }
  0xa4   :  { %1499 = vmatpush.bf16.msra.mxu1 %v3026_v3  ;;  %v2435_v3 = vld [vmem:[#allocation5 + $0x118] sm:$0xf0]  ;;  %v3484_v27 = vld [vmem:[#allocation5 + $0x32c] sm:$0xf] }
  0xa5   :  { %1512 = vmatpush.bf16.msra.mxu2 %v2390_v4  ;;  %v3476_v4 = vld [vmem:[#allocation5 + $0x2ec] sm:$0xf]  ;;  %v2710_v41 = vor.u32 %v3484_v27, %v2707_v29  ;;  %v3598_v27 = vld [vmem:[#allocation7 + $0xb4] sm:$0xf0]  ;;  %v3081_v29 = vld [vmem:[#allocation7 + $0x20] sm:$0xf] }
  0xa6   :  { %1525 = vmatpush.bf16.msra.mxu3 %v2518_v10  ;;  %v2803_v10 = vld [vmem:[#allocation5 + $0x3f8] sm:$0xf0]  ;;  %v3448_v39 = vld [vmem:[#allocation5 + $0x20c] sm:$0xf] }
  0xa7   :  { %1487 = vmatpush.bf16.msra.mxu0 %v2882_v17  ;;  %v3059_v17 = vld [vmem:[#allocation5 + $0x5f8] sm:$0xf0]  ;;  %v2806_v20 = vor.u32 %v3508_v6, %v2803_v10  ;;  %v2742_v6 = vor.u32 %v3492_v61, %v2739_v63  ;;  %v3456_v10 = vld [vmem:[#allocation5 + $0x24c] sm:$0xf]  ;;  %v2566_v53 = vor.u32 %v3448_v39, %v2563_v43  ;;  %v3588_v63 = vld [vmem:[#allocation7 + $0x64] sm:$0xf0] }
  0xa8   :  { %1500 = vmatpush.bf16.msra.mxu1 %v3010_v18  ;;  %v2438_v18 = vor.u32 %v3416_v2, %v2435_v3  ;;  %v3062_v26 = vor.u32 %v3572_v16, %v3059_v17  ;;  %v3556_v2 = vld [vmem:[#allocation5 + $0x56c] sm:$0xf]  ;;  %v2995_v3 = vld [vmem:[#allocation5 + $0x578] sm:$0xf0]  ;;  %v3073_v43 = vld [vmem:[#allocation7 + $0x10] sm:$0xf] }
  0xa9   :  { %1513 = vmatpush.bf16.msra.mxu2 %v2374_v19  ;;  %v2678_v19 = vor.u32 %v3476_v4, %v2675_v5  ;;  %v3520_v16 = vld [vmem:[#allocation5 + $0x44c] sm:$0xf]  ;;  %v2851_v17 = vld [vmem:[#allocation5 + $0x458] sm:$0xf0] }
  0xaa   :  { %1526 = vmatpush.bf16.msra.mxu3 %v2502_v23  ;;  %v2659_v23 = vld [vmem:[#allocation5 + $0x2d8] sm:$0xf0] }
  0xab   :  { %1488 = vmatpush.bf16.msra.mxu0 %v2866_v30  ;;  %v3568_v30 = vld [vmem:[#allocation5 + $0x5cc] sm:$0xf] }
  0xac   :  { %1501 = vmatpush.bf16.msra.mxu1 %v2994_v31  ;;  %v3043_v31 = vld [vmem:[#allocation5 + $0x5d8] sm:$0xf0] }
  0xad   :  { %1514 = vmatpush.bf16.msra.mxu2 %v2358_v33  ;;  %v2662_v33 = vor.u32 %v3472_v22, %v2659_v23  ;;  %v3046_v40 = vor.u32 %v3568_v30, %v3043_v31  ;;  %v2854_v23 = vor.u32 %v3520_v16, %v2851_v17  ;;  %v3516_v30 = vld [vmem:[#allocation5 + $0x42c] sm:$0xf]  ;;  %v2835_v31 = vld [vmem:[#allocation5 + $0x438] sm:$0xf0]  ;;  %v3097_v17 = vld [vmem:[#allocation7 + $0x40] sm:$0xf] }
  0xae   :  { %1527 = vmatpush.bf16.msra.mxu3 %v2486_v38  ;;  %v2643_v38 = vld [vmem:[#allocation5 + $0x2b8] sm:$0xf0]  ;;  %v2838_v42 = vor.u32 %v3516_v30, %v2835_v31  ;;  %v3580_v30 = vld [vmem:[#allocation7 + $0x24] sm:$0xf0] }
  0xaf   :  { %1489 = vmatpush.bf16.msra.mxu0 %v2850_v44  ;;  %v3564_v44 = vld [vmem:[#allocation5 + $0x5ac] sm:$0xf] }
  0xb0   :  { %1502 = vmatpush.bf16.msra.mxu1 %v2978_v45  ;;  %v3027_v45 = vld [vmem:[#allocation5 + $0x5b8] sm:$0xf0] }
  0xb1   :  { %1515 = vmatpush.bf16.msra.mxu2 %v2342_v46  ;;  %v2646_v46 = vor.u32 %v3468_v37, %v2643_v38  ;;  %v3030_v52 = vor.u32 %v3564_v44, %v3027_v45  ;;  %v3480_v44 = vld [vmem:[#allocation5 + $0x30c] sm:$0xf]  ;;  %v2691_v45 = vld [vmem:[#allocation5 + $0x318] sm:$0xf0] }
  0xb2   :  { %1528 = vmatpush.bf16.msra.mxu3 %v2470_v50  ;;  %v2627_v50 = vld [vmem:[#allocation5 + $0x298] sm:$0xf0] }
  0xb3   :  { %1490 = vmatpush.bf16.msra.mxu0 %v2834_v56  ;;  %v3560_v56 = vld [vmem:[#allocation5 + $0x58c] sm:$0xf]  ;;  %v2630_v57 = vor.u32 %v3464_v49, %v2627_v50  ;;  %v2947_v50 = vld [vmem:[#allocation5 + $0x518] sm:$0xf0] }
  0xb4   :  { %1503 = vmatpush.bf16.msra.mxu1 %v2962_v59  ;;  %v3460_v59 = vld [vmem:[#allocation5 + $0x26c] sm:$0xf] }
  0xb5   :  { %1516 = vmatpush.bf16.msra.mxu2 %v2326_v60  ;;  %v2611_v60 = vld [vmem:[#allocation5 + $0x278] sm:$0xf0]  ;;  %v3544_v49 = vld [vmem:[#allocation5 + $0x50c] sm:$0xf] }
  0xb6   :  { %1529 = vmatpush.bf16.msra.mxu3 %v2454_v0  ;;  %v3524_v0 = vld [vmem:[#allocation5 + $0x46c] sm:$0xf]  ;;  %v2614_v4 = vor.u32 %v3460_v59, %v2611_v60 }
  0xb7   :  { %1491 = vmatpush.bf16.msra.mxu0 %v2818_v7  ;;  %v2870_v7 = vor.u32 %v3524_v0, %v2867_v1 }
  0xb8   :  { %1504 = vmatpush.bf16.msra.mxu1 %v2946_v13  ;;  %v2998_v13 = vor.u32 %v3556_v2, %v2995_v3  ;;  %v3177_v2 = vld [vmem:[#allocation7 + $0xe0] sm:$0xf]  ;;  %v3604_v3 = vld [vmem:[#allocation7 + $0xe4] sm:$0xf0] }
  0xb9   :  { %1517 = vmatpush.bf16.msra.mxu2 %v2310_v14  ;;  %v2723_v14 = vld [vmem:[#allocation5 + $0x358] sm:$0xf0] }
  0xba   :  { %1530 = vmatpush.bf16.msra.mxu3 %v2438_v18  ;;  %1492 = vmatmul.bf16.vlgmr.msra.gmra.mxu0 %v3902_v32  ;;  %v3552_v18 = vld [vmem:[#allocation5 + $0x54c] sm:$0xf]  ;;  %v2726_v22 = vor.u32 %v3488_v12, %v2723_v14  ;;  %v3169_v12 = vld [vmem:[#allocation7 + $0xd0] sm:$0xf] }
  0xbb   :  { %1536 = vmatpush.bf16.msrb.mxu0 %v2678_v19  ;;  %1505 = vmatmul.bf16.vlgmr.msra.gmra.mxu1 %v3904_v35  ;;  %v2979_v19 = vld [vmem:[#allocation5 + $0x558] sm:$0xf0] }
  0xbc   :  { %1549 = vmatpush.bf16.msrb.mxu1 %v2806_v20  ;;  %1518 = vmatmul.bf16.vlgmr.msra.gmra.mxu2 %v3892_v9  ;;  %v3011_v9 = vld [vmem:[#allocation5 + $0x598] sm:$0xf0]  ;;  %v2598_v20 = vor.u32 %v3456_v10, %v2595_v11  ;;  %v2982_v28 = vor.u32 %v3552_v18, %v2979_v19  ;;  %v3586_v10 = vld [vmem:[#allocation7 + $0x54] sm:$0xf0]  ;;  %v3178_v11 = vor.u32 %v3604_v3, %v3177_v2  ;;  %v3161_v18 = vld [vmem:[#allocation7 + $0xc0] sm:$0xf] }
  0xbd   :  { %1562 = vmatpush.bf16.msrb.mxu2 %v2934_v21  ;;  %1531 = vmatmul.bf16.vlgmr.msra.gmra.mxu3 %v3899_v25  ;;  %v2886_v25 = vor.u32 %v3528_v54, %v2883_v55  ;;  %v3014_v62 = vor.u32 %v3560_v56, %v3011_v9  ;;  %v3924_v21 = vpop.f32.mrf.mxu1  ;;  %v3933_v54 = vld [vmem:[%s3971_s5] sm:$0xf]  ;;  %v3606_v56 = vld [vmem:[#allocation7 + $0xf4] sm:$0xf0]  ;;  %v3600_v19 = vld [vmem:[#allocation7 + $0xc4] sm:$0xf0] }
  0xbe   :  { %1575 = vmatpush.bf16.msrb.mxu3 %v3062_v26  ;;  %v3922_v5 = vpop.f32.mrf.mxu0  ;;  %v2579_v26 = vld [vmem:[#allocation5 + $0x238] sm:$0xf0]  ;;  %v3185_v55 = vld [vmem:[#allocation7 + $0xf0] sm:$0xf]  ;;  %v308_v61 = vperm.slane %v3933_v54, 0  ;;  %v309_v2 = vperm.slane %v3933_v54, 1 }
  0xbf   :  { %1537 = vmatpush.bf16.msrb.mxu0 %v2662_v33  ;;  %v2582_v38 = vor.u32 %v3452_v24, %v2579_v26  ;;  %v3186_v0 = vor.u32 %v3606_v56, %v3185_v55  ;;  %v3582_v24 = vld [vmem:[#allocation7 + $0x34] sm:$0xf0]  ;;  %v3153_v26 = vld [vmem:[#allocation7 + $0xb0] sm:$0xf]  ;;  %v3129_v56 = vld [vmem:[#allocation7 + $0x80] sm:$0xf] }
  0xc0   :  { %1550 = vmatpush.bf16.msrb.mxu1 %v2790_v34  ;;  %v3548_v34 = vld [vmem:[#allocation5 + $0x52c] sm:$0xf]  ;;  %v3928_v37 = vpop.f32.mrf.mxu3  ;;  %v3154_v31 = vor.u32 %v3598_v27, %v3153_v26  ;;  %v3603_v3 = vld [vmem:[#allocation7 + $0xe4] sm:$0xf] }
  0xc1   :  { %1563 = vmatpush.bf16.msrb.mxu2 %v2918_v36  ;;  %v2963_v36 = vld [vmem:[#allocation5 + $0x538] sm:$0xf0]  ;;  %v3599_v27 = vld [vmem:[#allocation7 + $0xc4] sm:$0xf] }
  0xc2   :  { %1576 = vmatpush.bf16.msrb.mxu3 %v3046_v40 }
  0xc3   :  { %1538 = vmatpush.bf16.msrb.mxu0 %v2646_v46  ;;  %v2966_v46 = vor.u32 %v3548_v34, %v2963_v36  ;;  %v3145_v36 = vld [vmem:[#allocation7 + $0xa0] sm:$0xf] }
  0xc4   :  { %1551 = vmatpush.bf16.msrb.mxu1 %v2774_v47  ;;  %v3512_v47 = vld [vmem:[#allocation5 + $0x40c] sm:$0xf] }
  0xc5   :  { %1564 = vmatpush.bf16.msrb.mxu2 %v2902_v48  ;;  %v3926_v33 = vpop.f32.mrf.mxu2  ;;  %v2819_v48 = vld [vmem:[#allocation5 + $0x418] sm:$0xf0]  ;;  %v1300_v9 = vpop.f32.mrf.mxu1 }
  0xc6   :  { %1577 = vmatpush.bf16.msrb.mxu3 %v3030_v52  ;;  %v1287_v40 = vpop.f32.mrf.mxu0  ;;  %v3590_v52 = vld [vmem:[#allocation7 + $0x74] sm:$0xf0]  ;;  %v3592_v9 = vld [vmem:[#allocation7 + $0x84] sm:$0xf0] }
  0xc7   :  { %1539 = vmatpush.bf16.msrb.mxu0 %v2630_v57  ;;  %v2694_v57 = vor.u32 %v3480_v44, %v2691_v45  ;;  %v3122_v59 = vor.u32 %v3590_v52, %v3121_v51  ;;  %v3082_v40 = vor.u32 %v3580_v30, %v3081_v29  ;;  %v3578_v44 = vld [vmem:[#allocation7 + $0x14] sm:$0xf0]  ;;  %v3589_v51 = vld [vmem:[#allocation7 + $0x74] sm:$0xf]  ;;  %v3225_v29 = vld [vmem:[#allocation7 + $0x140] sm:$0xf] }
  0xc8   :  { %1552 = vmatpush.bf16.msrb.mxu1 %v2758_v58  ;;  %v2822_v58 = vor.u32 %v3512_v47, %v2819_v48  ;;  %v1326_v1 = vpop.f32.mrf.mxu3  ;;  %v3074_v47 = vor.u32 %v3578_v44, %v3073_v43  ;;  %v3616_v30 = vld [vmem:[#allocation7 + $0x144] sm:$0xf0]  ;;  %v3155_v43 = vld [vmem:[#allocation7 + $0xb8] sm:$0xf0] }
  0xc9   :  { %1565 = vmatpush.bf16.msrb.mxu2 %v2886_v25  ;;  %v2950_v25 = vor.u32 %v3544_v49, %v2947_v50  ;;  %v3065_v49 = vld [vmem:[#allocation7] sm:$0xf]  ;;  %v3576_v50 = vld [vmem:[#allocation7 + $0x4] sm:$0xf0]  ;;  %v3226_v44 = vor.u32 %v3616_v30, %v3225_v29  ;;  %v3638_v29 = vld [vmem:[#allocation7 + $0x1f4] sm:$0xf0] }
  0xca   :  { %1578 = vmatpush.bf16.msrb.mxu3 %v3014_v62  ;;  %v3113_v62 = vld [vmem:[#allocation7 + $0x60] sm:$0xf] }
  0xcb   :  { %1540 = vmatpush.bf16.msrb.mxu0 %v2614_v4  ;;  %v3114_v4 = vor.u32 %v3588_v63, %v3113_v62  ;;  %v3130_v62 = vor.u32 %v3592_v9, %v3129_v56  ;;  %v3587_v63 = vld [vmem:[#allocation7 + $0x64] sm:$0xf]  ;;  %v3209_v9 = vld [vmem:[#allocation7 + $0x120] sm:$0xf] }
  0xcc   :  { %1553 = vmatpush.bf16.msrb.mxu1 %v2742_v6  ;;  %v1286_v6 = vadd.f32 %v3922_v5, %v308_v61 }
  0xcd   :  { %1566 = vmatpush.bf16.msrb.mxu2 %v2870_v7  ;;  %v1313_v60 = vpop.f32.mrf.mxu2  ;;  %v3105_v7 = vld [vmem:[#allocation7 + $0x50] sm:$0xf] }
  0xce   :  { %1579 = vmatpush.bf16.msrb.mxu3 %v2998_v13  ;;  %v3602_v13 = vld [vmem:[#allocation7 + $0xd4] sm:$0xf0]  ;;  %v3106_v14 = vor.u32 %v3586_v10, %v3105_v7  ;;  %v1299_v16 = vadd.f32 %v3924_v21, %v1286_v6  ;;  %v3249_v6 = vld [vmem:[#allocation7 + $0x170] sm:$0xf] }
  0xcf   :  { %1541 = vmatpush.bf16.msrb.mxu0 %v2598_v20  ;;  %v3170_v5 = vor.u32 %v3602_v13, %v3169_v12  ;;  %v3622_v7 = vld [vmem:[#allocation7 + $0x174] sm:$0xf0]  ;;  %v3241_v13 = vld [vmem:[#allocation7 + $0x160] sm:$0xf] }
  0xd0   :  { %1554 = vmatpush.bf16.msrb.mxu1 %v2726_v22  ;;  %v3250_v12 = vor.u32 %v3622_v7, %v3249_v6  ;;  %v3610_v6 = vld [vmem:[#allocation7 + $0x114] sm:$0xf0] }
  0xd1   :  { %1567 = vmatpush.bf16.msrb.mxu2 %v2854_v23  ;;  %v3089_v23 = vld [vmem:[#allocation7 + $0x30] sm:$0xf] }
  0xd2   :  { %1580 = vmatpush.bf16.msrb.mxu3 %v2982_v28  ;;  %v3090_v21 = vor.u32 %v3582_v24, %v3089_v23  ;;  %v3583_v23 = vld [vmem:[#allocation7 + $0x44] sm:$0xf]  ;;  %v3099_v24 = vld [vmem:[#allocation7 + $0x48] sm:$0xf0] }
  0xd3   :  { %1542 = vmatpush.bf16.msrb.mxu0 %v2582_v38  ;;  %v3596_v38 = vld [vmem:[#allocation7 + $0xa4] sm:$0xf0] }
  0xd4   :  { %1555 = vmatpush.bf16.msrb.mxu1 %v2710_v41  ;;  %v3146_v45 = vor.u32 %v3596_v38, %v3145_v36  ;;  %v3581_v36 = vld [vmem:[#allocation7 + $0x34] sm:$0xf]  ;;  %v3091_v38 = vld [vmem:[#allocation7 + $0x38] sm:$0xf0] }
  0xd5   :  { %1568 = vmatpush.bf16.msrb.mxu2 %v2838_v42 }
  0xd6   :  { %1581 = vmatpush.bf16.msrb.mxu3 %v2966_v46  ;;  %v3137_v46 = vld [vmem:[#allocation7 + $0x90] sm:$0xf] }
  0xd7   :  { %1543 = vmatpush.bf16.msrb.mxu0 %v2566_v53  ;;  %v1337_v20 = vpop.f32.mrf.mxu0  ;;  %v3123_v53 = vld [vmem:[#allocation7 + $0x78] sm:$0xf0] }
  0xd8   :  { %1556 = vmatpush.bf16.msrb.mxu1 %v2694_v57  ;;  %v3126_v61 = vor.u32 %v3589_v51, %v3123_v53  ;;  %v3595_v51 = vld [vmem:[#allocation7 + $0xa4] sm:$0xf] }
  0xd9   :  { %1569 = vmatpush.bf16.msrb.mxu2 %v2822_v58  ;;  %v3605_v58 = vld [vmem:[#allocation7 + $0xf4] sm:$0xf] }
  0xda   :  { %1582 = vmatpush.bf16.msrb.mxu3 %v2950_v25  ;;  %1544 = vmatmul.bf16.vlgmr.msrb.gmra.mxu0 %v3890_v8  ;;  %v3584_v8 = vld [vmem:[#allocation7 + $0x44] sm:$0xf0]  ;;  %v3187_v25 = vld [vmem:[#allocation7 + $0xf8] sm:$0xf0] }
  0xdb   :  { %1986 = vmatpush.bf16.msra.mxu0 %v3122_v59  ;;  %1557 = vmatmul.bf16.vlgmr.msrb.gmra.mxu1 %v3894_v15  ;;  %v3098_v22 = vor.u32 %v3584_v8, %v3097_v17  ;;  %v1350_v15 = vpop.f32.mrf.mxu1  ;;  %v3066_v59 = vor.u32 %v3576_v50, %v3065_v49  ;;  %v3190_v1 = vor.u32 %v3605_v58, %v3187_v25  ;;  %v3107_v17 = vld [vmem:[#allocation7 + $0x58] sm:$0xf0] }
  0xdc   :  { %1999 = vmatpush.bf16.msra.mxu1 %v3186_v0  ;;  %1570 = vmatmul.bf16.vlgmr.msrb.gmra.mxu2 %v3902_v32  ;;  %v1312_v32 = vadd.f32 %v3926_v33, %v1299_v16  ;;  %v3115_v0 = vld [vmem:[#allocation7 + $0x68] sm:$0xf0]  ;;  %v3585_v16 = vld [vmem:[#allocation7 + $0x54] sm:$0xf] }
  0xdd   :  { %1583 = vmatmul.bf16.vlgmr.msrb.gmra.mxu3 %v3904_v35  ;;  %v3162_v35 = vor.u32 %v3600_v19, %v3161_v18  ;;  %v3601_v18 = vld [vmem:[#allocation7 + $0xd4] sm:$0xf]  ;;  %v3171_v19 = vld [vmem:[#allocation7 + $0xd8] sm:$0xf0]  ;;  %2012 = vmatpush.bf16.msra.mxu2 %v3250_v12  ;;  %v3575_v12 = vld [vmem:[#allocation7 + $0x4] sm:$0xf] }
  0xde   :  { %v1325_v28 = vadd.f32 %v3928_v37, %v1312_v32  ;;  %v3594_v37 = vld [vmem:[#allocation7 + $0x94] sm:$0xf0]  ;;  %v3110_v32 = vor.u32 %v3585_v16, %v3107_v17  ;;  %v3591_v16 = vld [vmem:[#allocation7 + $0x84] sm:$0xf]  ;;  %v3131_v17 = vld [vmem:[#allocation7 + $0x88] sm:$0xf0] }
  0xdf   :  { %1987 = vmatpush.bf16.msra.mxu0 %v3114_v4  ;;  %v1363_v34 = vpop.f32.mrf.mxu2  ;;  %v1339_v33 = vpop.f32.mrf.mxu0  ;;  %v3138_v52 = vor.u32 %v3594_v37, %v3137_v46  ;;  %v3179_v4 = vld [vmem:[#allocation7 + $0xe8] sm:$0xf0]  ;;  %v3094_v37 = vor.u32 %v3581_v36, %v3091_v38 }
  0xe0   :  { %2000 = vmatpush.bf16.msra.mxu1 %v3178_v11  ;;  %v3944_v39 = vpop.f32.mrf.mxu3  ;;  %v1338_v42 = vadd.f32 %v1337_v20, %v1325_v28  ;;  %v3118_v11 = vor.u32 %v3587_v63, %v3115_v0  ;;  %v3182_v8 = vor.u32 %v3603_v3, %v3179_v4  ;;  %v3593_v63 = vld [vmem:[#allocation7 + $0x94] sm:$0xf]  ;;  %v3139_v0 = vld [vmem:[#allocation7 + $0x98] sm:$0xf0]  ;;  %v3201_v4 = vld [vmem:[#allocation7 + $0x110] sm:$0xf] }
  0xe2   :  { %v1351_v48 = vadd.f32 %v1350_v15, %v1338_v42  ;;  %v3618_v15 = vld [vmem:[#allocation7 + $0x154] sm:$0xf0]  ;;  %v3597_v42 = vld [vmem:[#allocation7 + $0xb4] sm:$0xf] }
  0xe3   :  { %1988 = vmatpush.bf16.msra.mxu0 %v3106_v14  ;;  %v1352_v41 = vpop.f32.mrf.mxu1  ;;  %v3620_v14 = vld [vmem:[#allocation7 + $0x164] sm:$0xf0]  ;;  %v3158_v49 = vor.u32 %v3597_v42, %v3155_v43  ;;  %v3615_v43 = vld [vmem:[#allocation7 + $0x144] sm:$0xf] }
  0xe4   :  { %2001 = vmatpush.bf16.msra.mxu1 %v3170_v5  ;;  %v1588_v60 = vmax.f32 %v1351_v48, 0.0  ;;  %v1364_v5 = vadd.f32 %v1363_v34, %v309_v2  ;;  %v3242_v20 = vor.u32 %v3620_v14, %v3241_v13  ;;  %v3083_v48 = vld [vmem:[#allocation7 + $0x28] sm:$0xf0]  ;;  %v3142_v14 = vor.u32 %v3593_v63, %v3139_v0  ;;  %v3273_v0 = vld [vmem:[#allocation7 + $0x1a0] sm:$0xf] }
  0xe5   :  { %v3067_v13 = vld [vmem:[#allocation7 + $0x8] sm:$0xf0] }
  0xe6   :  { %v3947_v10 = vpack.c.bf16 %v1588_v60, %v1588_v60  ;;  %v1377_v26 = vadd.f32 %v3944_v39, %v1364_v5  ;;  %2013 = vmatpush.bf16.msra.mxu2 %v3242_v20  ;;  %v3217_v39 = vld [vmem:[#allocation7 + $0x130] sm:$0xf]  ;;  %v3075_v60 = vld [vmem:[#allocation7 + $0x18] sm:$0xf0]  ;;  %v3202_v5 = vor.u32 %v3610_v6, %v3201_v4  ;;  %v3608_v20 = vld [vmem:[#allocation7 + $0x104] sm:$0xf0] }
  0xe7   :  { %1989 = vmatpush.bf16.msra.mxu0 %v3098_v22  ;;  %v1365_v55 = vpop.f32.mrf.mxu2  ;;  %v3233_v22 = vld [vmem:[#allocation7 + $0x150] sm:$0xf]  ;;  %v3607_v6 = vld [vmem:[#allocation7 + $0x104] sm:$0xf] }
  0xe8   :  { %2002 = vmatpush.bf16.msra.mxu1 %v3162_v35  ;;  %v1378_v57 = vpop.f32.mrf.mxu3  ;;  %v3174_v35 = vor.u32 %v3601_v18, %v3171_v19  ;;  %v3234_v28 = vor.u32 %v3618_v15, %v3233_v22  ;;  %v3193_v19 = vld [vmem:[#allocation7 + $0x100] sm:$0xf]  ;;  %v3070_v22 = vor.u32 %v3575_v12, %v3067_v13  ;;  %v3621_v15 = vld [vmem:[#allocation7 + $0x174] sm:$0xf]  ;;  %v3265_v13 = vld [vmem:[#allocation7 + $0x190] sm:$0xf] }
  0xe9   :  { %v3612_v57 = vld [vmem:[#allocation7 + $0x124] sm:$0xf0] }
  0xea   :  { %2014 = vmatpush.bf16.msra.mxu2 %v3234_v28  ;;  %v3210_v2 = vor.u32 %v3612_v57, %v3209_v9  ;;  %v3313_v28 = vld [vmem:[#allocation7 + $0x1f0] sm:$0xf]  ;;  %v3211_v57 = vld [vmem:[#allocation7 + $0x128] sm:$0xf0] }
  0xeb   :  { %1990 = vmatpush.bf16.msra.mxu0 %v3090_v21  ;;  %v3163_v21 = vld [vmem:[#allocation7 + $0xc8] sm:$0xf0]  ;;  %v3314_v30 = vor.u32 %v3638_v29, %v3313_v28 }
  0xec   :  { %2003 = vmatpush.bf16.msra.mxu1 %v3154_v31  ;;  %v3102_v31 = vor.u32 %v3583_v23, %v3099_v24  ;;  %v3166_v33 = vor.u32 %v3599_v27, %v3163_v21  ;;  %v3134_v23 = vor.u32 %v3591_v16, %v3131_v17  ;;  %v3194_v24 = vor.u32 %v3608_v20, %v3193_v19  ;;  %v3243_v27 = vld [vmem:[#allocation7 + $0x168] sm:$0xf0]  ;;  %v3624_v19 = vld [vmem:[#allocation7 + $0x184] sm:$0xf0] }
  0xed   :  { %2025 = vmatpush.bf16.msra.mxu3 %v3314_v30  ;;  %v3633_v30 = vld [vmem:[#allocation7 + $0x1d4] sm:$0xf] }
  0xee   :  { %2015 = vmatpush.bf16.msra.mxu2 %v3226_v44  ;;  %v3227_v44 = vld [vmem:[#allocation7 + $0x148] sm:$0xf0] }
  0xef   :  { %1991 = vmatpush.bf16.msra.mxu0 %v3082_v40 }
  0xf0   :  { %2004 = vmatpush.bf16.msra.mxu1 %v3146_v45  ;;  %v3614_v45 = vld [vmem:[#allocation7 + $0x134] sm:$0xf0] }
  0xf1   :  { %v3218_v53 = vor.u32 %v3614_v45, %v3217_v39  ;;  %v3297_v39 = vld [vmem:[#allocation7 + $0x1d0] sm:$0xf]  ;;  %v3634_v45 = vld [vmem:[#allocation7 + $0x1d4] sm:$0xf0] }
  0xf3   :  { %1992 = vmatpush.bf16.msra.mxu0 %v3074_v47  ;;  %v3579_v47 = vld [vmem:[#allocation7 + $0x24] sm:$0xf]  ;;  %2016 = vmatpush.bf16.msra.mxu2 %v3218_v53  ;;  %v3632_v53 = vld [vmem:[#allocation7 + $0x1c4] sm:$0xf0] }
  0xf4   :  { %2005 = vmatpush.bf16.msra.mxu1 %v3138_v52  ;;  %v3147_v52 = vld [vmem:[#allocation7 + $0xa8] sm:$0xf0]  ;;  %v3086_v58 = vor.u32 %v3579_v47, %v3083_v48  ;;  %v3613_v47 = vld [vmem:[#allocation7 + $0x134] sm:$0xf]  ;;  %v3219_v48 = vld [vmem:[#allocation7 + $0x138] sm:$0xf0] }
  0xf7   :  { %1993 = vmatpush.bf16.msra.mxu0 %v3066_v59  ;;  %v1389_v34 = vpop.f32.mrf.mxu0  ;;  %v3577_v59 = vld [vmem:[#allocation7 + $0x14] sm:$0xf]  ;;  %2017 = vmatpush.bf16.msra.mxu2 %v3210_v2 }
  0xf8   :  { %2006 = vmatpush.bf16.msra.mxu1 %v3130_v62  ;;  %v1390_v40 = vadd.f32 %v1389_v34, %v1377_v26  ;;  %v1402_v41 = vpop.f32.mrf.mxu1  ;;  %v3078_v7 = vor.u32 %v3577_v59, %v3075_v60  ;;  %v3619_v26 = vld [vmem:[#allocation7 + $0x164] sm:$0xf]  ;;  %v3235_v34 = vld [vmem:[#allocation7 + $0x158] sm:$0xf0]  ;;  %v310_v60 = vperm.slane %v3933_v54, 2 }
  0xf9   :  { %v3246_v21 = vor.u32 %v3619_v26, %v3243_v27  ;;  %v3307_v26 = vld [vmem:[#allocation7 + $0x1e8] sm:$0xf0] }
  0xfa   :  { %1994 = vmatmul.bf16.vlgmr.msra.gmra.mxu0 %v3947_v10  ;;  %v1403_v46 = vadd.f32 %v1402_v41, %v1390_v40  ;;  %v3305_v40 = vld [vmem:[#allocation7 + $0x1e0] sm:$0xf]  ;;  %v3636_v41 = vld [vmem:[#allocation7 + $0x1e4] sm:$0xf0] }
  0xfb   :  { %2038 = vmatpush.bf16.msrb.mxu0 %v3126_v61  ;;  %v3150_v61 = vor.u32 %v3595_v51, %v3147_v52  ;;  %2018 = vmatpush.bf16.msra.mxu2 %v3202_v5  ;;  %v3306_v42 = vor.u32 %v3636_v41, %v3305_v40  ;;  %v3222_v51 = vor.u32 %v3613_v47, %v3219_v48  ;;  %v3289_v52 = vld [vmem:[#allocation7 + $0x1c0] sm:$0xf]  ;;  %v3275_v47 = vld [vmem:[#allocation7 + $0x1a8] sm:$0xf0] }
  0xfc   :  { %2051 = vmatpush.bf16.msrb.mxu1 %v3190_v1  ;;  %v3290_v9 = vor.u32 %v3632_v53, %v3289_v52  ;;  %v3267_v52 = vld [vmem:[#allocation7 + $0x198] sm:$0xf0] }
  0xfd   :  { %2026 = vmatpush.bf16.msra.mxu3 %v3306_v42  ;;  %v3631_v42 = vld [vmem:[#allocation7 + $0x1c4] sm:$0xf] }
  0xff   :  { %2039 = vmatpush.bf16.msrb.mxu0 %v3118_v11  ;;  %v1415_v50 = vpop.f32.mrf.mxu2  ;;  %v1391_v62 = vpop.f32.mrf.mxu0  ;;  %2019 = vmatpush.bf16.msra.mxu2 %v3194_v24 }
 0x100   :  { %2052 = vmatpush.bf16.msrb.mxu1 %v3182_v8  ;;  %v1416_v55 = vadd.f32 %v1415_v50, %v1403_v46  ;;  %v1428_v56 = vpop.f32.mrf.mxu3  ;;  %v1404_v1 = vpop.f32.mrf.mxu1  ;;  %v3298_v46 = vor.u32 %v3634_v45, %v3297_v39  ;;  %v3203_v62 = vld [vmem:[#allocation7 + $0x118] sm:$0xf0]  ;;  %v3629_v39 = vld [vmem:[#allocation7 + $0x1b4] sm:$0xf] }
 0x101   :  { %v3628_v1 = vld [vmem:[#allocation7 + $0x1a4] sm:$0xf0]  ;;  %v3283_v45 = vld [vmem:[#allocation7 + $0x1b8] sm:$0xf0] }
 0x102   :  { %v1429_v25 = vadd.f32 %v1428_v56, %v1416_v55  ;;  %2027 = vmatpush.bf16.msra.mxu3 %v3298_v46  ;;  %v3611_v55 = vld [vmem:[#allocation7 + $0x124] sm:$0xf]  ;;  %v3274_v12 = vor.u32 %v3628_v1, %v3273_v0  ;;  %v3286_v46 = vor.u32 %v3629_v39, %v3283_v45 }
 0x103   :  { %2040 = vmatpush.bf16.msrb.mxu0 %v3110_v32  ;;  %v3251_v32 = vld [vmem:[#allocation7 + $0x178] sm:$0xf0]  ;;  %v3214_v59 = vor.u32 %v3611_v55, %v3211_v57  ;;  %v3623_v55 = vld [vmem:[#allocation7 + $0x184] sm:$0xf] }
 0x104   :  { %2053 = vmatpush.bf16.msrb.mxu1 %v3174_v35  ;;  %v1589_v3 = vmax.f32 %v1429_v25, 0.0  ;;  %v3254_v35 = vor.u32 %v3621_v15, %v3251_v32  ;;  %v3630_v25 = vld [vmem:[#allocation7 + $0x1b4] sm:$0xf0]  ;;  %v3315_v15 = vld [vmem:[#allocation7 + $0x1f8] sm:$0xf0]  ;;  %v3647_v39 = vld [vmem:[#allocation8 + $0x40] sm:$0xff] }
 0x106   :  { %v1593_v11 = vpack.c.bf16 %v1589_v3, %v1589_v3  ;;  %2064 = vmatpush.bf16.msrb.mxu2 %v3254_v35  ;;  %2028 = vmatpush.bf16.msra.mxu3 %v3290_v9  ;;  %v3635_v35 = vld [vmem:[#allocation7 + $0x1e4] sm:$0xf]  ;;  %v311_v9 = vperm.slane %v3933_v54, 3 }
 0x107   :  { %2041 = vmatpush.bf16.msrb.mxu0 %v3102_v31  ;;  %v1417_v8 = vpop.f32.mrf.mxu2  ;;  %v3617_v31 = vld [vmem:[#allocation7 + $0x154] sm:$0xf]  ;;  %v3310_v28 = vor.u32 %v3635_v35, %v3307_v26  ;;  %v3646_v35 = vld [vmem:[#allocation8 + $0x38] sm:$0xff] }
 0x108   :  { %2054 = vmatpush.bf16.msrb.mxu1 %v3166_v33  ;;  %v1430_v18 = vpop.f32.mrf.mxu3  ;;  %v3238_v38 = vor.u32 %v3617_v31, %v3235_v34  ;;  %v3299_v31 = vld [vmem:[#allocation7 + $0x1d8] sm:$0xf0]  ;;  %v3645_v26 = vld [vmem:[#allocation8 + $0x30] sm:$0xff] }
 0x109   :  { %2007 = vmatmul.bf16.vlgmr.msra.gmra.mxu1 %v1593_v11  ;;  %v3257_v18 = vld [vmem:[#allocation7 + $0x180] sm:$0xf] }
 0x10a   :  { %2065 = vmatpush.bf16.msrb.mxu2 %v3246_v21  ;;  %v3258_v20 = vor.u32 %v3624_v19, %v3257_v18 }
 0x10b   :  { %2042 = vmatpush.bf16.msrb.mxu0 %v3094_v37 }
 0x10c   :  { %2055 = vmatpush.bf16.msrb.mxu1 %v3158_v49 }
 0x10e   :  { %2066 = vmatpush.bf16.msrb.mxu2 %v3238_v38 }
 0x10f   :  { %2043 = vmatpush.bf16.msrb.mxu0 %v3086_v58  ;;  %v3281_v58 = vld [vmem:[#allocation7 + $0x1b0] sm:$0xf] }
 0x110   :  { %2056 = vmatpush.bf16.msrb.mxu1 %v3150_v61  ;;  %v3609_v61 = vld [vmem:[#allocation7 + $0x114] sm:$0xf]  ;;  %v3282_v63 = vor.u32 %v3630_v25, %v3281_v58 }
 0x111   :  { %v3206_v2 = vor.u32 %v3609_v61, %v3203_v62 }
 0x112   :  { %2029 = vmatpush.bf16.msra.mxu3 %v3282_v63 }
 0x113   :  { %2044 = vmatpush.bf16.msrb.mxu0 %v3078_v7  ;;  %v3195_v7 = vld [vmem:[#allocation7 + $0x108] sm:$0xf0] }
 0x114   :  { %2057 = vmatpush.bf16.msrb.mxu1 %v3142_v14  ;;  %v3626_v14 = vld [vmem:[#allocation7 + $0x194] sm:$0xf0]  ;;  %v3198_v16 = vor.u32 %v3607_v6, %v3195_v7 }
 0x115   :  { %v3266_v8 = vor.u32 %v3626_v14, %v3265_v13  ;;  %v1660_v14 = vld [vmem:[%s3971_s5 + $0x4] sm:$0x3] }
 0x116   :  { %2030 = vmatpush.bf16.msra.mxu3 %v3274_v12 }
 0x117   :  { %2045 = vmatpush.bf16.msrb.mxu0 %v3070_v22  ;;  %v1441_v36 = vpop.f32.mrf.mxu0  ;;  %v3637_v22 = vld [vmem:[#allocation7 + $0x1f4] sm:$0xf] }
 0x118   :  { %2058 = vmatpush.bf16.msrb.mxu1 %v3134_v23  ;;  %v1454_v33 = vpop.f32.mrf.mxu1  ;;  %v1442_v3 = vadd.f32 %v1441_v36, %v310_v60  ;;  %v3318_v23 = vor.u32 %v3637_v22, %v3315_v15  ;;  %v3302_v36 = vor.u32 %v3633_v30, %v3299_v31  ;;  %v3653_v30 = vld [vmem:[#allocation8 + $0x70] sm:$0xff] }
 0x119   :  { %v3641_v31 = vld [vmem:[#allocation8 + $0x10] sm:$0xff] }
 0x11a   :  { %2046 = vmatmul.bf16.vlgmr.msrb.gmra.mxu0 %v3947_v10  ;;  %v3230_v10 = vor.u32 %v3615_v43, %v3227_v44  ;;  %v1455_v17 = vadd.f32 %v1454_v33, %v1442_v3  ;;  %2031 = vmatpush.bf16.msra.mxu3 %v3266_v8  ;;  %v3291_v43 = vld [vmem:[#allocation7 + $0x1c8] sm:$0xf0] }
 0x11b   :  { %2059 = vmatmul.bf16.vlgmr.msrb.gmra.mxu1 %v1593_v11  ;;  %2226 = vmatpush.bf16.msra.mxu0 %v3646_v35 }
 0x11c   :  { %2067 = vmatpush.bf16.msrb.mxu2 %v3230_v10  ;;  %v3294_v10 = vor.u32 %v3631_v42, %v3291_v43  ;;  %v3650_v42 = vld [vmem:[#allocation8 + $0x58] sm:$0xff]  ;;  %v3649_v43 = vld [vmem:[#allocation8 + $0x50] sm:$0xff] }
 0x11e   :  { %2032 = vmatpush.bf16.msra.mxu3 %v3258_v20  ;;  %v1663_v20 = vperm.slane %v1660_v14, 1 }
 0x11f   :  { %v1467_v37 = vpop.f32.mrf.mxu2  ;;  %v1443_v49 = vpop.f32.mrf.mxu0  ;;  %2227 = vmatpush.bf16.msra.mxu0 %v3645_v26 }
 0x120   :  { %v1480_v50 = vpop.f32.mrf.mxu3  ;;  %v1456_v56 = vpop.f32.mrf.mxu1  ;;  %2068 = vmatpush.bf16.msrb.mxu2 %v3222_v51  ;;  %v1468_v5 = vadd.f32 %v1467_v37, %v1455_v17  ;;  %v3627_v37 = vld [vmem:[#allocation7 + $0x1a4] sm:$0xf]  ;;  %v3625_v51 = vld [vmem:[#allocation7 + $0x194] sm:$0xf] }
 0x121   :  { %v3278_v49 = vor.u32 %v3627_v37, %v3275_v47  ;;  %v3270_v53 = vor.u32 %v3625_v51, %v3267_v52  ;;  %v3259_v56 = vld [vmem:[#allocation7 + $0x188] sm:$0xf0] }
 0x122   :  { %v1481_v32 = vadd.f32 %v1480_v50, %v1468_v5  ;;  %2077 = vmatpush.bf16.msrb.mxu3 %v3318_v23  ;;  %v3262_v57 = vor.u32 %v3623_v55, %v3259_v56 }
 0x124   :  { %2069 = vmatpush.bf16.msrb.mxu2 %v3214_v59 }
 0x126   :  { %2078 = vmatpush.bf16.msrb.mxu3 %v3310_v28  ;;  %v3642_v28 = vld [vmem:[#allocation8 + $0x18] sm:$0xff] }
 0x127   :  { %v1469_v4 = vpop.f32.mrf.mxu2 }
 0x128   :  { %v1482_v11 = vpop.f32.mrf.mxu3  ;;  %2070 = vmatpush.bf16.msrb.mxu2 %v3206_v2 }
 0x12a   :  { %2079 = vmatpush.bf16.msrb.mxu3 %v3302_v36  ;;  %v3640_v36 = vld [vmem:[#allocation8 + $0x8] sm:$0xff] }
 0x12c   :  { %2071 = vmatpush.bf16.msrb.mxu2 %v3198_v16  ;;  %v1662_v16 = vperm.slane %v1660_v14, 0 }
 0x12e   :  { %2080 = vmatpush.bf16.msrb.mxu3 %v3294_v10  ;;  %v3648_v10 = vld [vmem:[#allocation8 + $0x48] sm:$0xff] }
 0x132   :  { %2081 = vmatpush.bf16.msrb.mxu3 %v3286_v46 }
 0x136   :  { %2082 = vmatpush.bf16.msrb.mxu3 %v3278_v49 }
 0x137   :  { %v1493_v24 = vpop.f32.mrf.mxu0 }
 0x138   :  { %v1494_v27 = vadd.f32 %v1493_v24, %v1481_v32  ;;  %v1506_v21 = vpop.f32.mrf.mxu1 }
 0x13a   :  { %v1507_v29 = vadd.f32 %v1506_v21, %v1494_v27  ;;  %2083 = vmatpush.bf16.msrb.mxu3 %v3270_v53  ;;  %v3644_v27 = vld [vmem:[#allocation8 + $0x28] sm:$0xff]  ;;  %v3643_v21 = vld [vmem:[#allocation8 + $0x20] sm:$0xff] }
 0x13b   :  { %2228 = vmatpush.bf16.msra.mxu0 %v3644_v27 }
 0x13c   :  { %v1590_v34 = vmax.f32 %v1507_v29, 0.0  ;;  %v3654_v29 = vld [vmem:[#allocation8 + $0x78] sm:$0xff] }
 0x13d   :  { %2239 = vmatpush.bf16.msra.mxu1 %v3654_v29 }
 0x13e   :  { %v1594_v38 = vpack.c.bf16 %v1590_v34, %v1590_v34  ;;  %2084 = vmatpush.bf16.msrb.mxu3 %v3262_v57  ;;  %v2255_v57 = vld [vmem:[%s3972_s6] sm:$0x3]  ;;  %s3834_s6 = smov [#allocation11]  }
 0x13f   :  { %v1519_v33 = vpop.f32.mrf.mxu2  ;;  %v1495_v41 = vpop.f32.mrf.mxu0  ;;  %2229 = vmatpush.bf16.msra.mxu0 %v3643_v21  ;;  %s2281_s12 = sshll.u32 %s3834_s6, 4  ;;  %s2282_s12 = int_to_ptr.vmem [resolvable:$true] %s2281_s12 }
 0x140   :  { %v1532_v40 = vpop.f32.mrf.mxu3  ;;  %2020 = vmatmul.bf16.vlgmr.msra.gmra.mxu2 %v1594_v38  ;;  %v1508_v44 = vpop.f32.mrf.mxu1  ;;  %v1520_v58 = vadd.f32 %v1519_v33, %v311_v9  ;;  %v3639_v33 = vld [vmem:[#allocation8] sm:$0xff] }
 0x141   :  { %2240 = vmatpush.bf16.msra.mxu1 %v3653_v30 }
 0x142   :  { %v1533_v25 = vadd.f32 %v1532_v40, %v1520_v58  ;;  %v3651_v40 = vld [vmem:[#allocation8 + $0x60] sm:$0xff]  ;;  %v3833_v58 = vmov 0  }
 0x143   :  { %2230 = vmatpush.bf16.msra.mxu0 %v3642_v28  ;;  %3668 = vset.pattern.permute.xlu0 %v3833_v58 }
 0x144   :  { %2258 = vperm.xlu0 %3668, %v2255_v57  }
 0x147   :  { %v1521_v48 = vpop.f32.mrf.mxu2  ;;  %2231 = vmatpush.bf16.msra.mxu0 %v3641_v31 }
 0x148   :  { %v1534_v50 = vpop.f32.mrf.mxu3 }
 0x14b   :  { %2232 = vmatpush.bf16.msra.mxu0 %v3640_v36 }
 0x14f   :  { %2233 = vmatpush.bf16.msra.mxu0 %v3639_v33 }
 0x150   :  { %2072 = vmatmul.bf16.vlgmr.msrb.gmra.mxu2 %v1594_v38  ;;  %v3652_v38 = vld [vmem:[#allocation8 + $0x68] sm:$0xff] }
 0x151   :  { %2241 = vmatpush.bf16.msra.mxu1 %v3652_v38 }
 0x155   :  { %2242 = vmatpush.bf16.msra.mxu1 %v3651_v40 }
 0x157   :  { %v1545_v59 = vpop.f32.mrf.mxu0 }
 0x158   :  { %v1558_v60 = vpop.f32.mrf.mxu1  ;;  %v1546_v61 = vadd.f32 %v1545_v59, %v1533_v25 }
 0x159   :  { %2243 = vmatpush.bf16.msra.mxu1 %v3650_v42 }
 0x15a   :  { %v1559_v62 = vadd.f32 %v1558_v60, %v1546_v61  ;;  %v3669_v60 = vld [vmem:[%s3971_s5 + $0x6] ss:$0 sm:$0xff] }
 0x15d   :  { %2244 = vmatpush.bf16.msra.mxu1 %v3649_v43 }
 0x15f   :  { %v1571_v63 = vpop.f32.mrf.mxu2  ;;  %v1547_v2 = vpop.f32.mrf.mxu0 }
 0x160   :  { %v1572_v0 = vadd.f32 %v1571_v63, %v1559_v62  ;;  %v1584_v1 = vpop.f32.mrf.mxu3  ;;  %v1560_v3 = vpop.f32.mrf.mxu1 }
 0x161   :  { %2245 = vmatpush.bf16.msra.mxu1 %v3648_v10  ;;  %v2254_v3 = vld [vmem:[#allocation10] sm:$0x1] }
 0x162   :  { %v1585_v4 = vadd.f32 %v1584_v1, %v1572_v0 }
 0x164   :  { %v1591_v6 = vmax.f32 %v1585_v4, 0.0 }
 0x165   :  { %2246 = vmatpush.bf16.msra.mxu1 %v3647_v39 }
 0x166   :  { %v1595_v7 = vpack.c.bf16 %v1591_v6, %v1591_v6 }
 0x167   :  { %v1573_v11 = vpop.f32.mrf.mxu2 }
 0x168   :  { %v1586_v54 = vpop.f32.mrf.mxu3  ;;  %2033 = vmatmul.bf16.vlgmr.msra.gmra.mxu3 %v1595_v7 }
 0x177   :  { %v1995_v12 = vpop.f32.mrf.mxu0 }
 0x178   :  { %2085 = vmatmul.bf16.vlgmr.msrb.gmra.mxu3 %v1595_v7  ;;  %v1996_v17 = vadd.f32 %v1995_v12, %v1662_v16 }
 0x17f   :  { %v1997_v13 = vpop.f32.mrf.mxu0 }
 0x186   :  { %v2008_v8 = vpop.f32.mrf.mxu1 }
 0x187   :  { %v2009_v5 = vadd.f32 %v2008_v8, %v1996_v17 }
 0x18e   :  { %v2010_v19 = vpop.f32.mrf.mxu1 }
 0x197   :  { %v2047_v18 = vpop.f32.mrf.mxu0 }
 0x198   :  { %v2048_v22 = vadd.f32 %v2047_v18, %v1663_v20  ;;  %v2060_v32 = vpop.f32.mrf.mxu1 }
 0x19a   :  { %v2061_v23 = vadd.f32 %v2060_v32, %v2048_v22 }
 0x19f   :  { %v2049_v15 = vpop.f32.mrf.mxu0 }
 0x1a0   :  { %v2062_v24 = vpop.f32.mrf.mxu1 }
 0x1b6   :  { %v2259_v4 = vpop.permute.xlu0 %2258 }
 0x1c3   :  { %v2021_v34 = vpop.f32.mrf.mxu2 }
 0x1c4   :  { %v2022_v46 = vadd.f32 %v2021_v34, %v2009_v5 }
 0x1cb   :  { %v2023_v41 = vpop.f32.mrf.mxu2 }
 0x1d3   :  { %v2073_v44 = vpop.f32.mrf.mxu2 }
 0x1d4   :  { %v2074_v51 = vadd.f32 %v2073_v44, %v2061_v23 }
 0x1db   :  { %v2075_v45 = vpop.f32.mrf.mxu2 }
 0x1eb   :  { %v2034_v37 = vpop.f32.mrf.mxu3 }
 0x1ec   :  { %v2035_v47 = vadd.f32 %v2034_v37, %v2022_v46 }
 0x1ee   :  { %v2090_v48 = vmax.f32 %v2035_v47, 0.0 }
 0x1f0   :  { %v2092_v49 = vpack.c.bf16 %v2090_v48, %v2090_v48 }
 0x1f2   :  { %2234 = vmatmul.bf16.vlgmr.msra.gmra.mxu0 %v2092_v49 }
 0x1f3   :  { %v2036_v50 = vpop.f32.mrf.mxu3 }
 0x1fb   :  { %v2086_v52 = vpop.f32.mrf.mxu3 }
 0x1fc   :  { %v2087_v53 = vadd.f32 %v2086_v52, %v2074_v51 }
 0x1fe   :  { %v2091_v55 = vmax.f32 %v2087_v53, 0.0 }
 0x200   :  { %v2093_v56 = vpack.c.bf16 %v2091_v55, %v2091_v55 }
 0x202   :  { %2247 = vmatmul.bf16.vlgmr.msra.gmra.mxu1 %v2093_v56 }
 0x203   :  { %v2088_v9 = vpop.f32.mrf.mxu3 }
 0x26f   :  { %v2235_v25 = vpop.f32.mrf.mxu0 }
 0x270   :  { %v2236_v61 = vadd.f32 %v3669_v60, %v2235_v25 }
 0x277   :  { %v2237_v59 = vpop.f32.mrf.mxu0 }
 0x27f   :  { %v2248_v62 = vpop.f32.mrf.mxu1 }
 0x280   :  { %v2249_v63 = vadd.f32 %v2248_v62, %v2236_v61 }
 0x282   :  { %v2252_v0 = vmax.f32 %v2249_v63, 0.0 }
 0x284   :  { %v2253_v1 = vpack.c.bf16 %v2252_v0, %v2252_v0 }
 0x286   :  { %2268 = vmatpush.bf16.xpose.msra.mxu2 %v2253_v1 }
 0x287   :  { %v2250_v2 = vpop.f32.mrf.mxu1 }
 0x28d   :  { %2269 = vmatmul.bf16.vlgmr.msra.gmra.mxu2 %v2254_v3 }
 0x310   :  { %v2270_v6 = vpop.f32.mrf.mxu2 }
 0x311   :  { %v2271_v7 = vadd.f32 %v2270_v6, %v2259_v4 }
 0x313   :  { %2275 = vst.msk [vmem:[#allocation11] sm:$0x3] %vm2274_vm0, %v2271_v7 }
 0x314   :  { %2286 = dma.vmem_to_hbm [thread:$0]  %s2282_s12, 32, %s2284_s1, [#allocation4]  }
 0x318   :  { %v2272_v11 = vpop.f32.mrf.mxu2 }
 0x319   :  { %3820 = dma.done.wait [#allocation4], 32  }
 0x31a   :  { %3821 = vsyncadd [#allocation4], 4294967264 }
 0x31b   :  { %2291 = vsyncpa [#allocation3], 1 }
 0x31c   :  { %2292 = vsyncpa [#allocation6], 1 }
 0x31d   :  { %2293 = vsyncpa [#allocation9], 1 }
 0x31e   :  { %2294 = vsyncpa [#allocation4], 1 }

</bundles_post_ra>
